<compile_context>
chip_gen: v7x
topology: tpu7x:2x2x1
jax: 0.10.0
libtpu: 0.0.40
codegen_flags: <defaults>
</compile_context>

<pallas_src>
from functools import partial

import jax
import jax.numpy as jnp
from jax.experimental import pallas as pl
from jax.experimental.pallas import tpu as pltpu


# ----------------------------------------------------------------------------
# Hyperparameters (the `hp` object the module's __init__ expects)
# ----------------------------------------------------------------------------
class HP:
    d_vin = 20          # visual feature dim
    d_vh = 32           # LSTM hidden size (4H = 128 -> lane-dense gates)
    d_vout = 16         # RNNEncoder output / SubNet hidden size
    n_layer = 1         # single layer  -> dropout inside LSTM = 0
    bidirectional = False
    n_class = 1
    dropout_v = 0.0
    dropout_prj = 0.0   # eval mode: dropout == identity anyway


LANES = 128  # TPU lane width; post-LSTM outputs are padded to this


# ----------------------------------------------------------------------------
# Pallas kernel: LSTM recurrence (length masked) + fused linear tail
# ----------------------------------------------------------------------------
def visual_kernel(x_ref, mask_ref,
                  w_ih_ref, w_hh_ref, b_lstm_ref,
                  w_rnn_ref, b_rnn_ref, w_rnn1_ref, b_rnn1_ref,
                  w2_ref, b2_ref, w3_ref, b3_ref,
                  emb_ref, out_ref, pred_ref):
    B = emb_ref.shape[0]                 # padded batch (multiple of 8 sublanes)
    H = w_hh_ref.shape[0]                # d_vh
    T = x_ref.shape[0] // B              # number of timesteps

    # --- hoisted input projection: one (T*B, d_vin_pad)@(d_vin_pad, 4H) MXU
    #     matmul, bias broadcast once.  Kept as a traced value (vregs), not
    #     written to a VMEM scratch. ---
    gates_all = (jnp.dot(x_ref[...], w_ih_ref[...],
                         preferred_element_type=jnp.float32)
                 + b_lstm_ref[...])

    def activations(gates, c_prev):
        # One full-vreg sigmoid on all 4H gate columns (PyTorch order i,f,g,o).
        # g-gate columns were pre-scaled by 2 so tanh(x) = 2*sigmoid(2x) - 1.
        sig = jax.nn.sigmoid(gates)
        i_g = sig[:, 0 * H:1 * H]
        o_g = sig[:, 3 * H:4 * H]
        g_g = 2.0 * sig[:, 2 * H:3 * H] - 1.0
        if c_prev is None:               # peeled t = 0: c_prev == 0
            c_new = i_g * g_g
        else:
            f_g = sig[:, 1 * H:2 * H]
            c_new = f_g * c_prev + i_g * g_g
        h_new = o_g * jnp.tanh(c_new)
        return h_new, c_new

    # --- peeled timestep 0: h0 = c0 = 0 -> no h @ W_hh, no f*c term ---
    h_new, c_new = activations(gates_all[0:B, :], None)
    valid0 = mask_ref[0:B, :] > 0.0      # pack_padded semantics: freeze at t>=len
    h = jnp.where(valid0, h_new, 0.0)
    c = jnp.where(valid0, c_new, 0.0)

    # --- timesteps 1..T-1, fully unrolled with static slice offsets ---
    for t in range(1, T):
        gates = gates_all[t * B:(t + 1) * B, :] + jnp.dot(
            h, w_hh_ref[...], preferred_element_type=jnp.float32)   # (B, 4H)
        h_new, c_new = activations(gates, c)
        valid = mask_ref[t * B:(t + 1) * B, :] > 0.0
        h = jnp.where(valid, h_new, h)
        c = jnp.where(valid, c_new, c)

    # --- RNNEncoder output projection + SubNet tail.  All weights below are
    #     zero-padded to 128 output lanes -> full-width lane-dense stores.
    #     emb and y1 are computed independently from h (W_rnn@W1 pre-fused). ---
    emb_ref[...] = jnp.dot(h, w_rnn_ref[...],
                           preferred_element_type=jnp.float32) + b_rnn_ref[...]
    y1 = jnp.tanh(jnp.dot(h, w_rnn1_ref[...],
                          preferred_element_type=jnp.float32) + b_rnn1_ref[...])
    y2 = jnp.tanh(jnp.dot(y1, w2_ref[...],
                          preferred_element_type=jnp.float32) + b2_ref[...])
    out_ref[...] = y2
    pred_ref[...] = jnp.dot(y2, w3_ref[...],
                            preferred_element_type=jnp.float32) + b3_ref[...]


# ----------------------------------------------------------------------------
# One-time parameter preparation (outside the jitted forward):
#   * scale g-gate columns by 2 (tanh via sigmoid)
#   * pad d_vin to a multiple of 8 sublanes
#   * fuse W_rnn @ W1 (+ bias) so y1 is independent of emb
#   * zero-pad all post-LSTM weights/biases to 128 output lanes
# ----------------------------------------------------------------------------
def prepare_params(params):
    H = params["w_hh"].shape[0]
    d_vin = params["w_ih"].shape[0]
    d_vin_pad = ((d_vin + 7) // 8) * 8

    scale = jnp.ones((4 * H,), jnp.float32).at[2 * H:3 * H].set(2.0)
    w_ih = params["w_ih"] * scale
    w_hh = params["w_hh"] * scale
    b_lstm = params["b_lstm"] * scale
    w_ih = jnp.pad(w_ih, ((0, d_vin_pad - d_vin), (0, 0)))

    # exact fusion: no nonlinearity between RNNEncoder.linear_1 and SubNet L1
    w_rnn1 = params["w_rnn"] @ params["w1"]
    b_rnn1 = params["b_rnn"] @ params["w1"] + params["b1"]

    pad_cols = lambda a: jnp.pad(a, ((0, 0), (0, LANES - a.shape[1])))
    pad_both = lambda a: jnp.pad(a, ((0, LANES - a.shape[0]),
                                     (0, LANES - a.shape[1])))
    return {
        "w_ih": w_ih, "w_hh": w_hh, "b_lstm": b_lstm,
        "w_rnn": pad_cols(params["w_rnn"]), "b_rnn": pad_cols(params["b_rnn"]),
        "w_rnn1": pad_cols(w_rnn1), "b_rnn1": pad_cols(b_rnn1),
        "w2": pad_both(params["w2"]), "b2": pad_cols(params["b2"]),
        "w3": pad_both(params["w3"]), "b3": pad_cols(params["b3"]),
    }


# ----------------------------------------------------------------------------
# Wrapper: per-call layout plumbing (time-major, padding, mask) + pallas_call
# ----------------------------------------------------------------------------
@partial(jax.jit, static_argnames=("d_vout", "n_class"))
def visual_forward(visual, v_len, prepared, d_vout, n_class):
    B, T, d_vin = visual.shape
    d_vh = prepared["w_hh"].shape[0]
    d_vin_pad = prepared["w_ih"].shape[0]
    B_pad = max(8, ((B + 7) // 8) * 8)   # fill the 8 sublanes of each vreg

    # time-major, batch padded, feature dim padded, flattened for the hoisted
    # x @ W_ih matmul
    x_tm = jnp.transpose(visual, (1, 0, 2)).astype(jnp.float32)    # (T, B, d_vin)
    x_tm = jnp.pad(x_tm, ((0, 0), (0, B_pad - B), (0, d_vin_pad - d_vin)))
    x2d = x_tm.reshape(T * B_pad, d_vin_pad)

    # precompute validity masks once (padded batch rows get length 0)
    lens = jnp.pad(v_len.astype(jnp.int32), (0, B_pad - B))
    mask = (jnp.arange(T, dtype=jnp.int32)[:, None] < lens[None, :]).astype(
        jnp.float32)
    mask2d = jnp.broadcast_to(mask[:, :, None], (T, B_pad, d_vh)).reshape(
        T * B_pad, d_vh)

    inputs = (
        x2d, mask2d,
        prepared["w_ih"], prepared["w_hh"], prepared["b_lstm"],
        prepared["w_rnn"], prepared["b_rnn"],
        prepared["w_rnn1"], prepared["b_rnn1"],
        prepared["w2"], prepared["b2"], prepared["w3"], prepared["b3"],
    )

    def full_spec(a):
        nd = a.ndim
        return pl.BlockSpec(a.shape, lambda i, _nd=nd: (0,) * _nd)

    out_shape = tuple(jax.ShapeDtypeStruct((B_pad, LANES), jnp.float32)
                      for _ in range(3))
    out_specs = tuple(pl.BlockSpec((B_pad, LANES), lambda i: (0, 0))
                      for _ in range(3))

    emb_p, out_p, pred_p = pl.pallas_call(
        visual_kernel,
        out_shape=out_shape,
        grid=(1,),
        in_specs=[full_spec(a) for a in inputs],
        out_specs=out_specs,
        compiler_params=pltpu.CompilerParams(
            dimension_semantics=("arbitrary",)),
    )(*inputs)

    # slice the real batch rows / feature columns back out
    return emb_p[:B, :d_vout], out_p[:B, :d_vout], pred_p[:B, :n_class]


# ----------------------------------------------------------------------------
# Deterministic parameter construction (PyTorch-default-style uniform init)
# ----------------------------------------------------------------------------
def make_params(hp, key):
    ks = jax.random.split(key, 14)
    u = lambda k, shape, bound: jax.random.uniform(
        k, shape, jnp.float32, -bound, bound)

    bh = 1.0 / jnp.sqrt(hp.d_vh)
    bo = 1.0 / jnp.sqrt(hp.d_vout)
    return {
        # LSTM (weights stored transposed: (in, 4H)); bias = b_ih + b_hh combined
        "w_ih": u(ks[0], (hp.d_vin, 4 * hp.d_vh), bh),
        "w_hh": u(ks[1], (hp.d_vh, 4 * hp.d_vh), bh),
        "b_lstm": u(ks[2], (1, 4 * hp.d_vh), bh) + u(ks[3], (1, 4 * hp.d_vh), bh),
        # RNNEncoder.linear_1: (d_vh -> d_vout)
        "w_rnn": u(ks[4], (hp.d_vh, hp.d_vout), bh),
        "b_rnn": u(ks[5], (1, hp.d_vout), bh),
        # SubNet
        "w1": u(ks[6], (hp.d_vout, hp.d_vout), bo),
        "b1": u(ks[7], (1, hp.d_vout), bo),
        "w2": u(ks[8], (hp.d_vout, hp.d_vout), bo),
        "b2": u(ks[9], (1, hp.d_vout), bo),
        "w3": u(ks[10], (hp.d_vout, hp.n_class), bo),
        "b3": u(ks[11], (1, hp.n_class), bo),
    }


# ----------------------------------------------------------------------------
# Pure-JAX reference (same math as the PyTorch module) for a sanity check
# ----------------------------------------------------------------------------
def visual_reference(visual, v_len, params):
    B, T, _ = visual.shape
    H = params["w_hh"].shape[0]
    h = jnp.zeros((B, H), jnp.float32)
    c = jnp.zeros((B, H), jnp.float32)
    lens = v_len.reshape(B, 1).astype(jnp.int32)
    for t in range(T):
        x_t = visual[:, t, :].astype(jnp.float32)
        gates = x_t @ params["w_ih"] + h @ params["w_hh"] + params["b_lstm"]
        i_g = jax.nn.sigmoid(gates[:, 0 * H:1 * H])
        f_g = jax.nn.sigmoid(gates[:, 1 * H:2 * H])
        g_g = jnp.tanh(gates[:, 2 * H:3 * H])
        o_g = jax.nn.sigmoid(gates[:, 3 * H:4 * H])
        c_new = f_g * c + i_g * g_g
        h_new = o_g * jnp.tanh(c_new)
        valid = t < lens
        h = jnp.where(valid, h_new, h)
        c = jnp.where(valid, c_new, c)
    emb = h @ params["w_rnn"] + params["b_rnn"]
    y1 = jnp.tanh(emb @ params["w1"] + params["b1"])
    y2 = jnp.tanh(y1 @ params["w2"] + params["b2"])
    y3 = y2 @ params["w3"] + params["b3"]
    return emb, y2, y3


if __name__ == "__main__":
    hp = HP()
    key = jax.random.PRNGKey(0)
    k_par, k_x = jax.random.split(key)

    B, T = 4, 8
    params = make_params(hp, k_par)
    prepared = prepare_params(params)          # one-time: scale/pad/fuse weights
    visual = jax.random.normal(k_x, (B, T, hp.d_vin), jnp.float32)
    v_len = jnp.array([8, 5, 3, 6], dtype=jnp.int32)   # variable sequence lengths

    emb, vis_out, preds = visual_forward(visual, v_len, prepared,
                                         d_vout=hp.d_vout, n_class=hp.n_class)
    jax.block_until_ready((emb, vis_out, preds))

    # sanity check against pure-JAX reference (original, un-fused params)
    r_emb, r_out, r_pred = visual_reference(visual, v_len, params)
    assert emb.shape == (B, hp.d_vout)
    assert vis_out.shape == (B, hp.d_vout)
    assert preds.shape == (B, hp.n_class)
    assert jnp.allclose(emb, r_emb, rtol=2e-3, atol=2e-3)
    assert jnp.allclose(vis_out, r_out, rtol=2e-3, atol=2e-3)
    assert jnp.allclose(preds, r_pred, rtol=2e-3, atol=2e-3)

    print("KERNEL_OK")
</pallas_src>

<mosaic_0001>
module attributes {stable_mosaic.version = 11 : i64} {
  func.func @visual_kernel(%arg0: i32, %arg1: memref<64x24xf32, #tpu.memory_space<vmem>>, %arg2: memref<64x32xf32, #tpu.memory_space<vmem>>, %arg3: memref<24x128xf32, #tpu.memory_space<vmem>>, %arg4: memref<32x128xf32, #tpu.memory_space<vmem>>, %arg5: memref<1x128xf32, #tpu.memory_space<vmem>>, %arg6: memref<32x128xf32, #tpu.memory_space<vmem>>, %arg7: memref<1x128xf32, #tpu.memory_space<vmem>>, %arg8: memref<32x128xf32, #tpu.memory_space<vmem>>, %arg9: memref<1x128xf32, #tpu.memory_space<vmem>>, %arg10: memref<128x128xf32, #tpu.memory_space<vmem>>, %arg11: memref<1x128xf32, #tpu.memory_space<vmem>>, %arg12: memref<128x128xf32, #tpu.memory_space<vmem>>, %arg13: memref<1x128xf32, #tpu.memory_space<vmem>>, %arg14: memref<8x128xf32, #tpu.memory_space<vmem>>, %arg15: memref<8x128xf32, #tpu.memory_space<vmem>>, %arg16: memref<8x128xf32, #tpu.memory_space<vmem>>) attributes {dimension_semantics = [#tpu.dimension_semantics<arbitrary>], iteration_bounds = array<i64: 1>, scalar_prefetch = 0 : i64, scratch_operands = 0 : i64, tpu.core_type = #tpu.core_type<tc>, window_params = [{pipeline_mode = #tpu.pipeline_mode<synchronous>, transform_indices = @transform_0, window_bounds = array<i64: 64, 24>}, {pipeline_mode = #tpu.pipeline_mode<synchronous>, transform_indices = @transform_1, window_bounds = array<i64: 64, 32>}, {pipeline_mode = #tpu.pipeline_mode<synchronous>, transform_indices = @transform_2, window_bounds = array<i64: 24, 128>}, {pipeline_mode = #tpu.pipeline_mode<synchronous>, transform_indices = @transform_3, window_bounds = array<i64: 32, 128>}, {pipeline_mode = #tpu.pipeline_mode<synchronous>, transform_indices = @transform_4, window_bounds = array<i64: 1, 128>}, {pipeline_mode = #tpu.pipeline_mode<synchronous>, transform_indices = @transform_5, window_bounds = array<i64: 32, 128>}, {pipeline_mode = #tpu.pipeline_mode<synchronous>, transform_indices = @transform_6, window_bounds = array<i64: 1, 128>}, {pipeline_mode = #tpu.pipeline_mode<synchronous>, transform_indices = @transform_7, window_bounds = array<i64: 32, 128>}, {pipeline_mode = #tpu.pipeline_mode<synchronous>, transform_indices = @transform_8, window_bounds = array<i64: 1, 128>}, {pipeline_mode = #tpu.pipeline_mode<synchronous>, transform_indices = @transform_9, window_bounds = array<i64: 128, 128>}, {pipeline_mode = #tpu.pipeline_mode<synchronous>, transform_indices = @transform_10, window_bounds = array<i64: 1, 128>}, {pipeline_mode = #tpu.pipeline_mode<synchronous>, transform_indices = @transform_11, window_bounds = array<i64: 128, 128>}, {pipeline_mode = #tpu.pipeline_mode<synchronous>, transform_indices = @transform_12, window_bounds = array<i64: 1, 128>}, {pipeline_mode = #tpu.pipeline_mode<synchronous>, transform_indices = @transform_13, window_bounds = array<i64: 8, 128>}, {pipeline_mode = #tpu.pipeline_mode<synchronous>, transform_indices = @transform_14, window_bounds = array<i64: 8, 128>}, {pipeline_mode = #tpu.pipeline_mode<synchronous>, transform_indices = @transform_15, window_bounds = array<i64: 8, 128>}]} {
    %c0 = arith.constant 0 : index
    %c0_0 = arith.constant 0 : index
    %0 = vector.load %arg1[%c0, %c0_0] : memref<64x24xf32, #tpu.memory_space<vmem>>, vector<64x24xf32>
    %c0_1 = arith.constant 0 : index
    %c0_2 = arith.constant 0 : index
    %1 = vector.load %arg3[%c0_1, %c0_2] : memref<24x128xf32, #tpu.memory_space<vmem>>, vector<24x128xf32>
    %cst = arith.constant dense<0.000000e+00> : vector<64x128xf32>
    %2 = tpu.matmul %0, %1, %cst {dimension_numbers = #tpu.dot_dimension_numbers<[1], [0], [0], [1], [0, 0, 1, 1], [], []>} : vector<64x24xf32>, vector<24x128xf32>, vector<64x128xf32> -> vector<64x128xf32>
    %c0_3 = arith.constant 0 : index
    %c0_4 = arith.constant 0 : index
    %3 = vector.load %arg5[%c0_3, %c0_4] : memref<1x128xf32, #tpu.memory_space<vmem>>, vector<1x128xf32>
    %4 = vector.broadcast %3 : vector<1x128xf32> to vector<64x128xf32>
    %5 = arith.addf %2, %4 : vector<64x128xf32>
    %6 = vector.extract_strided_slice %5 {offsets = [0, 0], sizes = [8, 128], strides = [1, 1]} : vector<64x128xf32> to vector<8x128xf32>
    %7 = arith.negf %6 : vector<8x128xf32>
    %8 = math.exp %7 : vector<8x128xf32>
    %cst_5 = arith.constant 1.000000e+00 : f32
    %9 = vector.broadcast %cst_5 : f32 to vector<8x128xf32>
    %10 = arith.addf %9, %8 : vector<8x128xf32>
    %11 = arith.divf %9, %10 : vector<8x128xf32>
    %12 = vector.extract_strided_slice %11 {offsets = [0, 0], sizes = [8, 32], strides = [1, 1]} : vector<8x128xf32> to vector<8x32xf32>
    %13 = vector.extract_strided_slice %11 {offsets = [0, 96], sizes = [8, 32], strides = [1, 1]} : vector<8x128xf32> to vector<8x32xf32>
    %14 = vector.extract_strided_slice %11 {offsets = [0, 64], sizes = [8, 32], strides = [1, 1]} : vector<8x128xf32> to vector<8x32xf32>
    %cst_6 = arith.constant 2.000000e+00 : f32
    %15 = vector.broadcast %cst_6 : f32 to vector<8x32xf32>
    %16 = arith.mulf %15, %14 : vector<8x32xf32>
    %cst_7 = arith.constant 1.000000e+00 : f32
    %17 = vector.broadcast %cst_7 : f32 to vector<8x32xf32>
    %18 = arith.subf %16, %17 : vector<8x32xf32>
    %19 = arith.mulf %12, %18 : vector<8x32xf32>
    %20 = math.tanh %19 : vector<8x32xf32>
    %21 = arith.mulf %13, %20 : vector<8x32xf32>
    %c0_8 = arith.constant 0 : index
    %c0_9 = arith.constant 0 : index
    %22 = vector.load %arg2[%c0_8, %c0_9] : memref<64x32xf32, #tpu.memory_space<vmem>>, vector<8x32xf32>
    %cst_10 = arith.constant 0.000000e+00 : f32
    %23 = vector.broadcast %cst_10 : f32 to vector<8x32xf32>
    %24 = arith.cmpf ogt, %22, %23 : vector<8x32xf32>
    %cst_11 = arith.constant 0.000000e+00 : f32
    %25 = vector.broadcast %cst_11 : f32 to vector<8x32xf32>
    %26 = arith.select %24, %21, %25 : vector<8x32xi1>, vector<8x32xf32>
    %cst_12 = arith.constant 0.000000e+00 : f32
    %27 = vector.broadcast %cst_12 : f32 to vector<8x32xf32>
    %28 = arith.select %24, %19, %27 : vector<8x32xi1>, vector<8x32xf32>
    %29 = vector.extract_strided_slice %5 {offsets = [8, 0], sizes = [8, 128], strides = [1, 1]} : vector<64x128xf32> to vector<8x128xf32>
    %c0_13 = arith.constant 0 : index
    %c0_14 = arith.constant 0 : index
    %30 = vector.load %arg4[%c0_13, %c0_14] : memref<32x128xf32, #tpu.memory_space<vmem>>, vector<32x128xf32>
    %cst_15 = arith.constant dense<0.000000e+00> : vector<8x128xf32>
    %31 = tpu.matmul %26, %30, %cst_15 {dimension_numbers = #tpu.dot_dimension_numbers<[1], [0], [0], [1], [0, 0, 1, 1], [], []>} : vector<8x32xf32>, vector<32x128xf32>, vector<8x128xf32> -> vector<8x128xf32>
    %32 = arith.addf %29, %31 : vector<8x128xf32>
    %33 = arith.negf %32 : vector<8x128xf32>
    %34 = math.exp %33 : vector<8x128xf32>
    %cst_16 = arith.constant 1.000000e+00 : f32
    %35 = vector.broadcast %cst_16 : f32 to vector<8x128xf32>
    %36 = arith.addf %35, %34 : vector<8x128xf32>
    %37 = arith.divf %35, %36 : vector<8x128xf32>
    %38 = vector.extract_strided_slice %37 {offsets = [0, 0], sizes = [8, 32], strides = [1, 1]} : vector<8x128xf32> to vector<8x32xf32>
    %39 = vector.extract_strided_slice %37 {offsets = [0, 96], sizes = [8, 32], strides = [1, 1]} : vector<8x128xf32> to vector<8x32xf32>
    %40 = vector.extract_strided_slice %37 {offsets = [0, 64], sizes = [8, 32], strides = [1, 1]} : vector<8x128xf32> to vector<8x32xf32>
    %cst_17 = arith.constant 2.000000e+00 : f32
    %41 = vector.broadcast %cst_17 : f32 to vector<8x32xf32>
    %42 = arith.mulf %41, %40 : vector<8x32xf32>
    %cst_18 = arith.constant 1.000000e+00 : f32
    %43 = vector.broadcast %cst_18 : f32 to vector<8x32xf32>
    %44 = arith.subf %42, %43 : vector<8x32xf32>
    %45 = vector.extract_strided_slice %37 {offsets = [0, 32], sizes = [8, 32], strides = [1, 1]} : vector<8x128xf32> to vector<8x32xf32>
    %46 = arith.mulf %45, %28 : vector<8x32xf32>
    %47 = arith.mulf %38, %44 : vector<8x32xf32>
    %48 = arith.addf %46, %47 : vector<8x32xf32>
    %49 = math.tanh %48 : vector<8x32xf32>
    %50 = arith.mulf %39, %49 : vector<8x32xf32>
    %c8 = arith.constant 8 : index
    %c0_19 = arith.constant 0 : index
    %51 = vector.load %arg2[%c8, %c0_19] : memref<64x32xf32, #tpu.memory_space<vmem>>, vector<8x32xf32>
    %cst_20 = arith.constant 0.000000e+00 : f32
    %52 = vector.broadcast %cst_20 : f32 to vector<8x32xf32>
    %53 = arith.cmpf ogt, %51, %52 : vector<8x32xf32>
    %54 = arith.select %53, %50, %26 : vector<8x32xi1>, vector<8x32xf32>
    %55 = arith.select %53, %48, %28 : vector<8x32xi1>, vector<8x32xf32>
    %56 = vector.extract_strided_slice %5 {offsets = [16, 0], sizes = [8, 128], strides = [1, 1]} : vector<64x128xf32> to vector<8x128xf32>
    %c0_21 = arith.constant 0 : index
    %c0_22 = arith.constant 0 : index
    %57 = vector.load %arg4[%c0_21, %c0_22] : memref<32x128xf32, #tpu.memory_space<vmem>>, vector<32x128xf32>
    %cst_23 = arith.constant dense<0.000000e+00> : vector<8x128xf32>
    %58 = tpu.matmul %54, %57, %cst_23 {dimension_numbers = #tpu.dot_dimension_numbers<[1], [0], [0], [1], [0, 0, 1, 1], [], []>} : vector<8x32xf32>, vector<32x128xf32>, vector<8x128xf32> -> vector<8x128xf32>
    %59 = arith.addf %56, %58 : vector<8x128xf32>
    %60 = arith.negf %59 : vector<8x128xf32>
    %61 = math.exp %60 : vector<8x128xf32>
    %cst_24 = arith.constant 1.000000e+00 : f32
    %62 = vector.broadcast %cst_24 : f32 to vector<8x128xf32>
    %63 = arith.addf %62, %61 : vector<8x128xf32>
    %64 = arith.divf %62, %63 : vector<8x128xf32>
    %65 = vector.extract_strided_slice %64 {offsets = [0, 0], sizes = [8, 32], strides = [1, 1]} : vector<8x128xf32> to vector<8x32xf32>
    %66 = vector.extract_strided_slice %64 {offsets = [0, 96], sizes = [8, 32], strides = [1, 1]} : vector<8x128xf32> to vector<8x32xf32>
    %67 = vector.extract_strided_slice %64 {offsets = [0, 64], sizes = [8, 32], strides = [1, 1]} : vector<8x128xf32> to vector<8x32xf32>
    %cst_25 = arith.constant 2.000000e+00 : f32
    %68 = vector.broadcast %cst_25 : f32 to vector<8x32xf32>
    %69 = arith.mulf %68, %67 : vector<8x32xf32>
    %cst_26 = arith.constant 1.000000e+00 : f32
    %70 = vector.broadcast %cst_26 : f32 to vector<8x32xf32>
    %71 = arith.subf %69, %70 : vector<8x32xf32>
    %72 = vector.extract_strided_slice %64 {offsets = [0, 32], sizes = [8, 32], strides = [1, 1]} : vector<8x128xf32> to vector<8x32xf32>
    %73 = arith.mulf %72, %55 : vector<8x32xf32>
    %74 = arith.mulf %65, %71 : vector<8x32xf32>
    %75 = arith.addf %73, %74 : vector<8x32xf32>
    %76 = math.tanh %75 : vector<8x32xf32>
    %77 = arith.mulf %66, %76 : vector<8x32xf32>
    %c16 = arith.constant 16 : index
    %c0_27 = arith.constant 0 : index
    %78 = vector.load %arg2[%c16, %c0_27] : memref<64x32xf32, #tpu.memory_space<vmem>>, vector<8x32xf32>
    %cst_28 = arith.constant 0.000000e+00 : f32
    %79 = vector.broadcast %cst_28 : f32 to vector<8x32xf32>
    %80 = arith.cmpf ogt, %78, %79 : vector<8x32xf32>
    %81 = arith.select %80, %77, %54 : vector<8x32xi1>, vector<8x32xf32>
    %82 = arith.select %80, %75, %55 : vector<8x32xi1>, vector<8x32xf32>
    %83 = vector.extract_strided_slice %5 {offsets = [24, 0], sizes = [8, 128], strides = [1, 1]} : vector<64x128xf32> to vector<8x128xf32>
    %c0_29 = arith.constant 0 : index
    %c0_30 = arith.constant 0 : index
    %84 = vector.load %arg4[%c0_29, %c0_30] : memref<32x128xf32, #tpu.memory_space<vmem>>, vector<32x128xf32>
    %cst_31 = arith.constant dense<0.000000e+00> : vector<8x128xf32>
    %85 = tpu.matmul %81, %84, %cst_31 {dimension_numbers = #tpu.dot_dimension_numbers<[1], [0], [0], [1], [0, 0, 1, 1], [], []>} : vector<8x32xf32>, vector<32x128xf32>, vector<8x128xf32> -> vector<8x128xf32>
    %86 = arith.addf %83, %85 : vector<8x128xf32>
    %87 = arith.negf %86 : vector<8x128xf32>
    %88 = math.exp %87 : vector<8x128xf32>
    %cst_32 = arith.constant 1.000000e+00 : f32
    %89 = vector.broadcast %cst_32 : f32 to vector<8x128xf32>
    %90 = arith.addf %89, %88 : vector<8x128xf32>
    %91 = arith.divf %89, %90 : vector<8x128xf32>
    %92 = vector.extract_strided_slice %91 {offsets = [0, 0], sizes = [8, 32], strides = [1, 1]} : vector<8x128xf32> to vector<8x32xf32>
    %93 = vector.extract_strided_slice %91 {offsets = [0, 96], sizes = [8, 32], strides = [1, 1]} : vector<8x128xf32> to vector<8x32xf32>
    %94 = vector.extract_strided_slice %91 {offsets = [0, 64], sizes = [8, 32], strides = [1, 1]} : vector<8x128xf32> to vector<8x32xf32>
    %cst_33 = arith.constant 2.000000e+00 : f32
    %95 = vector.broadcast %cst_33 : f32 to vector<8x32xf32>
    %96 = arith.mulf %95, %94 : vector<8x32xf32>
    %cst_34 = arith.constant 1.000000e+00 : f32
    %97 = vector.broadcast %cst_34 : f32 to vector<8x32xf32>
    %98 = arith.subf %96, %97 : vector<8x32xf32>
    %99 = vector.extract_strided_slice %91 {offsets = [0, 32], sizes = [8, 32], strides = [1, 1]} : vector<8x128xf32> to vector<8x32xf32>
    %100 = arith.mulf %99, %82 : vector<8x32xf32>
    %101 = arith.mulf %92, %98 : vector<8x32xf32>
    %102 = arith.addf %100, %101 : vector<8x32xf32>
    %103 = math.tanh %102 : vector<8x32xf32>
    %104 = arith.mulf %93, %103 : vector<8x32xf32>
    %c24 = arith.constant 24 : index
    %c0_35 = arith.constant 0 : index
    %105 = vector.load %arg2[%c24, %c0_35] : memref<64x32xf32, #tpu.memory_space<vmem>>, vector<8x32xf32>
    %cst_36 = arith.constant 0.000000e+00 : f32
    %106 = vector.broadcast %cst_36 : f32 to vector<8x32xf32>
    %107 = arith.cmpf ogt, %105, %106 : vector<8x32xf32>
    %108 = arith.select %107, %104, %81 : vector<8x32xi1>, vector<8x32xf32>
    %109 = arith.select %107, %102, %82 : vector<8x32xi1>, vector<8x32xf32>
    %110 = vector.extract_strided_slice %5 {offsets = [32, 0], sizes = [8, 128], strides = [1, 1]} : vector<64x128xf32> to vector<8x128xf32>
    %c0_37 = arith.constant 0 : index
    %c0_38 = arith.constant 0 : index
    %111 = vector.load %arg4[%c0_37, %c0_38] : memref<32x128xf32, #tpu.memory_space<vmem>>, vector<32x128xf32>
    %cst_39 = arith.constant dense<0.000000e+00> : vector<8x128xf32>
    %112 = tpu.matmul %108, %111, %cst_39 {dimension_numbers = #tpu.dot_dimension_numbers<[1], [0], [0], [1], [0, 0, 1, 1], [], []>} : vector<8x32xf32>, vector<32x128xf32>, vector<8x128xf32> -> vector<8x128xf32>
    %113 = arith.addf %110, %112 : vector<8x128xf32>
    %114 = arith.negf %113 : vector<8x128xf32>
    %115 = math.exp %114 : vector<8x128xf32>
    %cst_40 = arith.constant 1.000000e+00 : f32
    %116 = vector.broadcast %cst_40 : f32 to vector<8x128xf32>
    %117 = arith.addf %116, %115 : vector<8x128xf32>
    %118 = arith.divf %116, %117 : vector<8x128xf32>
    %119 = vector.extract_strided_slice %118 {offsets = [0, 0], sizes = [8, 32], strides = [1, 1]} : vector<8x128xf32> to vector<8x32xf32>
    %120 = vector.extract_strided_slice %118 {offsets = [0, 96], sizes = [8, 32], strides = [1, 1]} : vector<8x128xf32> to vector<8x32xf32>
    %121 = vector.extract_strided_slice %118 {offsets = [0, 64], sizes = [8, 32], strides = [1, 1]} : vector<8x128xf32> to vector<8x32xf32>
    %cst_41 = arith.constant 2.000000e+00 : f32
    %122 = vector.broadcast %cst_41 : f32 to vector<8x32xf32>
    %123 = arith.mulf %122, %121 : vector<8x32xf32>
    %cst_42 = arith.constant 1.000000e+00 : f32
    %124 = vector.broadcast %cst_42 : f32 to vector<8x32xf32>
    %125 = arith.subf %123, %124 : vector<8x32xf32>
    %126 = vector.extract_strided_slice %118 {offsets = [0, 32], sizes = [8, 32], strides = [1, 1]} : vector<8x128xf32> to vector<8x32xf32>
    %127 = arith.mulf %126, %109 : vector<8x32xf32>
    %128 = arith.mulf %119, %125 : vector<8x32xf32>
    %129 = arith.addf %127, %128 : vector<8x32xf32>
    %130 = math.tanh %129 : vector<8x32xf32>
    %131 = arith.mulf %120, %130 : vector<8x32xf32>
    %c32 = arith.constant 32 : index
    %c0_43 = arith.constant 0 : index
    %132 = vector.load %arg2[%c32, %c0_43] : memref<64x32xf32, #tpu.memory_space<vmem>>, vector<8x32xf32>
    %cst_44 = arith.constant 0.000000e+00 : f32
    %133 = vector.broadcast %cst_44 : f32 to vector<8x32xf32>
    %134 = arith.cmpf ogt, %132, %133 : vector<8x32xf32>
    %135 = arith.select %134, %131, %108 : vector<8x32xi1>, vector<8x32xf32>
    %136 = arith.select %134, %129, %109 : vector<8x32xi1>, vector<8x32xf32>
    %137 = vector.extract_strided_slice %5 {offsets = [40, 0], sizes = [8, 128], strides = [1, 1]} : vector<64x128xf32> to vector<8x128xf32>
    %c0_45 = arith.constant 0 : index
    %c0_46 = arith.constant 0 : index
    %138 = vector.load %arg4[%c0_45, %c0_46] : memref<32x128xf32, #tpu.memory_space<vmem>>, vector<32x128xf32>
    %cst_47 = arith.constant dense<0.000000e+00> : vector<8x128xf32>
    %139 = tpu.matmul %135, %138, %cst_47 {dimension_numbers = #tpu.dot_dimension_numbers<[1], [0], [0], [1], [0, 0, 1, 1], [], []>} : vector<8x32xf32>, vector<32x128xf32>, vector<8x128xf32> -> vector<8x128xf32>
    %140 = arith.addf %137, %139 : vector<8x128xf32>
    %141 = arith.negf %140 : vector<8x128xf32>
    %142 = math.exp %141 : vector<8x128xf32>
    %cst_48 = arith.constant 1.000000e+00 : f32
    %143 = vector.broadcast %cst_48 : f32 to vector<8x128xf32>
    %144 = arith.addf %143, %142 : vector<8x128xf32>
    %145 = arith.divf %143, %144 : vector<8x128xf32>
    %146 = vector.extract_strided_slice %145 {offsets = [0, 0], sizes = [8, 32], strides = [1, 1]} : vector<8x128xf32> to vector<8x32xf32>
    %147 = vector.extract_strided_slice %145 {offsets = [0, 96], sizes = [8, 32], strides = [1, 1]} : vector<8x128xf32> to vector<8x32xf32>
    %148 = vector.extract_strided_slice %145 {offsets = [0, 64], sizes = [8, 32], strides = [1, 1]} : vector<8x128xf32> to vector<8x32xf32>
    %cst_49 = arith.constant 2.000000e+00 : f32
    %149 = vector.broadcast %cst_49 : f32 to vector<8x32xf32>
    %150 = arith.mulf %149, %148 : vector<8x32xf32>
    %cst_50 = arith.constant 1.000000e+00 : f32
    %151 = vector.broadcast %cst_50 : f32 to vector<8x32xf32>
    %152 = arith.subf %150, %151 : vector<8x32xf32>
    %153 = vector.extract_strided_slice %145 {offsets = [0, 32], sizes = [8, 32], strides = [1, 1]} : vector<8x128xf32> to vector<8x32xf32>
    %154 = arith.mulf %153, %136 : vector<8x32xf32>
    %155 = arith.mulf %146, %152 : vector<8x32xf32>
    %156 = arith.addf %154, %155 : vector<8x32xf32>
    %157 = math.tanh %156 : vector<8x32xf32>
    %158 = arith.mulf %147, %157 : vector<8x32xf32>
    %c40 = arith.constant 40 : index
    %c0_51 = arith.constant 0 : index
    %159 = vector.load %arg2[%c40, %c0_51] : memref<64x32xf32, #tpu.memory_space<vmem>>, vector<8x32xf32>
    %cst_52 = arith.constant 0.000000e+00 : f32
    %160 = vector.broadcast %cst_52 : f32 to vector<8x32xf32>
    %161 = arith.cmpf ogt, %159, %160 : vector<8x32xf32>
    %162 = arith.select %161, %158, %135 : vector<8x32xi1>, vector<8x32xf32>
    %163 = arith.select %161, %156, %136 : vector<8x32xi1>, vector<8x32xf32>
    %164 = vector.extract_strided_slice %5 {offsets = [48, 0], sizes = [8, 128], strides = [1, 1]} : vector<64x128xf32> to vector<8x128xf32>
    %c0_53 = arith.constant 0 : index
    %c0_54 = arith.constant 0 : index
    %165 = vector.load %arg4[%c0_53, %c0_54] : memref<32x128xf32, #tpu.memory_space<vmem>>, vector<32x128xf32>
    %cst_55 = arith.constant dense<0.000000e+00> : vector<8x128xf32>
    %166 = tpu.matmul %162, %165, %cst_55 {dimension_numbers = #tpu.dot_dimension_numbers<[1], [0], [0], [1], [0, 0, 1, 1], [], []>} : vector<8x32xf32>, vector<32x128xf32>, vector<8x128xf32> -> vector<8x128xf32>
    %167 = arith.addf %164, %166 : vector<8x128xf32>
    %168 = arith.negf %167 : vector<8x128xf32>
    %169 = math.exp %168 : vector<8x128xf32>
    %cst_56 = arith.constant 1.000000e+00 : f32
    %170 = vector.broadcast %cst_56 : f32 to vector<8x128xf32>
    %171 = arith.addf %170, %169 : vector<8x128xf32>
    %172 = arith.divf %170, %171 : vector<8x128xf32>
    %173 = vector.extract_strided_slice %172 {offsets = [0, 0], sizes = [8, 32], strides = [1, 1]} : vector<8x128xf32> to vector<8x32xf32>
    %174 = vector.extract_strided_slice %172 {offsets = [0, 96], sizes = [8, 32], strides = [1, 1]} : vector<8x128xf32> to vector<8x32xf32>
    %175 = vector.extract_strided_slice %172 {offsets = [0, 64], sizes = [8, 32], strides = [1, 1]} : vector<8x128xf32> to vector<8x32xf32>
    %cst_57 = arith.constant 2.000000e+00 : f32
    %176 = vector.broadcast %cst_57 : f32 to vector<8x32xf32>
    %177 = arith.mulf %176, %175 : vector<8x32xf32>
    %cst_58 = arith.constant 1.000000e+00 : f32
    %178 = vector.broadcast %cst_58 : f32 to vector<8x32xf32>
    %179 = arith.subf %177, %178 : vector<8x32xf32>
    %180 = vector.extract_strided_slice %172 {offsets = [0, 32], sizes = [8, 32], strides = [1, 1]} : vector<8x128xf32> to vector<8x32xf32>
    %181 = arith.mulf %180, %163 : vector<8x32xf32>
    %182 = arith.mulf %173, %179 : vector<8x32xf32>
    %183 = arith.addf %181, %182 : vector<8x32xf32>
    %184 = math.tanh %183 : vector<8x32xf32>
    %185 = arith.mulf %174, %184 : vector<8x32xf32>
    %c48 = arith.constant 48 : index
    %c0_59 = arith.constant 0 : index
    %186 = vector.load %arg2[%c48, %c0_59] : memref<64x32xf32, #tpu.memory_space<vmem>>, vector<8x32xf32>
    %cst_60 = arith.constant 0.000000e+00 : f32
    %187 = vector.broadcast %cst_60 : f32 to vector<8x32xf32>
    %188 = arith.cmpf ogt, %186, %187 : vector<8x32xf32>
    %189 = arith.select %188, %185, %162 : vector<8x32xi1>, vector<8x32xf32>
    %190 = arith.select %188, %183, %163 : vector<8x32xi1>, vector<8x32xf32>
    %191 = vector.extract_strided_slice %5 {offsets = [56, 0], sizes = [8, 128], strides = [1, 1]} : vector<64x128xf32> to vector<8x128xf32>
    %c0_61 = arith.constant 0 : index
    %c0_62 = arith.constant 0 : index
    %192 = vector.load %arg4[%c0_61, %c0_62] : memref<32x128xf32, #tpu.memory_space<vmem>>, vector<32x128xf32>
    %cst_63 = arith.constant dense<0.000000e+00> : vector<8x128xf32>
    %193 = tpu.matmul %189, %192, %cst_63 {dimension_numbers = #tpu.dot_dimension_numbers<[1], [0], [0], [1], [0, 0, 1, 1], [], []>} : vector<8x32xf32>, vector<32x128xf32>, vector<8x128xf32> -> vector<8x128xf32>
    %194 = arith.addf %191, %193 : vector<8x128xf32>
    %195 = arith.negf %194 : vector<8x128xf32>
    %196 = math.exp %195 : vector<8x128xf32>
    %cst_64 = arith.constant 1.000000e+00 : f32
    %197 = vector.broadcast %cst_64 : f32 to vector<8x128xf32>
    %198 = arith.addf %197, %196 : vector<8x128xf32>
    %199 = arith.divf %197, %198 : vector<8x128xf32>
    %200 = vector.extract_strided_slice %199 {offsets = [0, 0], sizes = [8, 32], strides = [1, 1]} : vector<8x128xf32> to vector<8x32xf32>
    %201 = vector.extract_strided_slice %199 {offsets = [0, 96], sizes = [8, 32], strides = [1, 1]} : vector<8x128xf32> to vector<8x32xf32>
    %202 = vector.extract_strided_slice %199 {offsets = [0, 64], sizes = [8, 32], strides = [1, 1]} : vector<8x128xf32> to vector<8x32xf32>
    %cst_65 = arith.constant 2.000000e+00 : f32
    %203 = vector.broadcast %cst_65 : f32 to vector<8x32xf32>
    %204 = arith.mulf %203, %202 : vector<8x32xf32>
    %cst_66 = arith.constant 1.000000e+00 : f32
    %205 = vector.broadcast %cst_66 : f32 to vector<8x32xf32>
    %206 = arith.subf %204, %205 : vector<8x32xf32>
    %207 = vector.extract_strided_slice %199 {offsets = [0, 32], sizes = [8, 32], strides = [1, 1]} : vector<8x128xf32> to vector<8x32xf32>
    %208 = arith.mulf %207, %190 : vector<8x32xf32>
    %209 = arith.mulf %200, %206 : vector<8x32xf32>
    %210 = arith.addf %208, %209 : vector<8x32xf32>
    %211 = math.tanh %210 : vector<8x32xf32>
    %212 = arith.mulf %201, %211 : vector<8x32xf32>
    %c56 = arith.constant 56 : index
    %c0_67 = arith.constant 0 : index
    %213 = vector.load %arg2[%c56, %c0_67] : memref<64x32xf32, #tpu.memory_space<vmem>>, vector<8x32xf32>
    %cst_68 = arith.constant 0.000000e+00 : f32
    %214 = vector.broadcast %cst_68 : f32 to vector<8x32xf32>
    %215 = arith.cmpf ogt, %213, %214 : vector<8x32xf32>
    %216 = arith.select %215, %212, %189 : vector<8x32xi1>, vector<8x32xf32>
    %c0_69 = arith.constant 0 : index
    %c0_70 = arith.constant 0 : index
    %217 = vector.load %arg6[%c0_69, %c0_70] : memref<32x128xf32, #tpu.memory_space<vmem>>, vector<32x128xf32>
    %cst_71 = arith.constant dense<0.000000e+00> : vector<8x128xf32>
    %218 = tpu.matmul %216, %217, %cst_71 {dimension_numbers = #tpu.dot_dimension_numbers<[1], [0], [0], [1], [0, 0, 1, 1], [], []>} : vector<8x32xf32>, vector<32x128xf32>, vector<8x128xf32> -> vector<8x128xf32>
    %c0_72 = arith.constant 0 : index
    %c0_73 = arith.constant 0 : index
    %219 = vector.load %arg7[%c0_72, %c0_73] : memref<1x128xf32, #tpu.memory_space<vmem>>, vector<1x128xf32>
    %220 = vector.broadcast %219 : vector<1x128xf32> to vector<8x128xf32>
    %221 = arith.addf %218, %220 : vector<8x128xf32>
    %c0_74 = arith.constant 0 : index
    %c0_75 = arith.constant 0 : index
    %222 = vector.load %arg14[%c0_74, %c0_75] : memref<8x128xf32, #tpu.memory_space<vmem>>, vector<8x128xf32>
    tpu.vector_store %arg14[%c0_74, %c0_75], %221 {strides = array<i32>} : memref<8x128xf32, #tpu.memory_space<vmem>>, vector<8x128xf32>,
    %c0_76 = arith.constant 0 : index
    %c0_77 = arith.constant 0 : index
    %223 = vector.load %arg8[%c0_76, %c0_77] : memref<32x128xf32, #tpu.memory_space<vmem>>, vector<32x128xf32>
    %cst_78 = arith.constant dense<0.000000e+00> : vector<8x128xf32>
    %224 = tpu.matmul %216, %223, %cst_78 {dimension_numbers = #tpu.dot_dimension_numbers<[1], [0], [0], [1], [0, 0, 1, 1], [], []>} : vector<8x32xf32>, vector<32x128xf32>, vector<8x128xf32> -> vector<8x128xf32>
    %c0_79 = arith.constant 0 : index
    %c0_80 = arith.constant 0 : index
    %225 = vector.load %arg9[%c0_79, %c0_80] : memref<1x128xf32, #tpu.memory_space<vmem>>, vector<1x128xf32>
    %226 = vector.broadcast %225 : vector<1x128xf32> to vector<8x128xf32>
    %227 = arith.addf %224, %226 : vector<8x128xf32>
    %228 = math.tanh %227 : vector<8x128xf32>
    %c0_81 = arith.constant 0 : index
    %c0_82 = arith.constant 0 : index
    %229 = vector.load %arg10[%c0_81, %c0_82] : memref<128x128xf32, #tpu.memory_space<vmem>>, vector<128x128xf32>
    %cst_83 = arith.constant dense<0.000000e+00> : vector<8x128xf32>
    %230 = tpu.matmul %228, %229, %cst_83 {dimension_numbers = #tpu.dot_dimension_numbers<[1], [0], [0], [1], [0, 0, 1, 1], [], []>} : vector<8x128xf32>, vector<128x128xf32>, vector<8x128xf32> -> vector<8x128xf32>
    %c0_84 = arith.constant 0 : index
    %c0_85 = arith.constant 0 : index
    %231 = vector.load %arg11[%c0_84, %c0_85] : memref<1x128xf32, #tpu.memory_space<vmem>>, vector<1x128xf32>
    %232 = vector.broadcast %231 : vector<1x128xf32> to vector<8x128xf32>
    %233 = arith.addf %230, %232 : vector<8x128xf32>
    %234 = math.tanh %233 : vector<8x128xf32>
    %c0_86 = arith.constant 0 : index
    %c0_87 = arith.constant 0 : index
    %235 = vector.load %arg15[%c0_86, %c0_87] : memref<8x128xf32, #tpu.memory_space<vmem>>, vector<8x128xf32>
    tpu.vector_store %arg15[%c0_86, %c0_87], %234 {strides = array<i32>} : memref<8x128xf32, #tpu.memory_space<vmem>>, vector<8x128xf32>,
    %c0_88 = arith.constant 0 : index
    %c0_89 = arith.constant 0 : index
    %236 = vector.load %arg12[%c0_88, %c0_89] : memref<128x128xf32, #tpu.memory_space<vmem>>, vector<128x128xf32>
    %cst_90 = arith.constant dense<0.000000e+00> : vector<8x128xf32>
    %237 = tpu.matmul %234, %236, %cst_90 {dimension_numbers = #tpu.dot_dimension_numbers<[1], [0], [0], [1], [0, 0, 1, 1], [], []>} : vector<8x128xf32>, vector<128x128xf32>, vector<8x128xf32> -> vector<8x128xf32>
    %c0_91 = arith.constant 0 : index
    %c0_92 = arith.constant 0 : index
    %238 = vector.load %arg13[%c0_91, %c0_92] : memref<1x128xf32, #tpu.memory_space<vmem>>, vector<1x128xf32>
    %239 = vector.broadcast %238 : vector<1x128xf32> to vector<8x128xf32>
    %240 = arith.addf %237, %239 : vector<8x128xf32>
    %c0_93 = arith.constant 0 : index
    %c0_94 = arith.constant 0 : index
    %241 = vector.load %arg16[%c0_93, %c0_94] : memref<8x128xf32, #tpu.memory_space<vmem>>, vector<8x128xf32>
    tpu.vector_store %arg16[%c0_93, %c0_94], %240 {strides = array<i32>} : memref<8x128xf32, #tpu.memory_space<vmem>>, vector<8x128xf32>,
    return
  }
  func.func @transform_0(%arg0: i32) -> (i32, i32) {
    %c0_i32 = arith.constant 0 : i32
    %c0_i32_0 = arith.constant 0 : i32
    %c0_i32_1 = arith.constant 0 : i32
    return %c0_i32, %c0_i32_0 : i32, i32
  }
  func.func @transform_1(%arg0: i32) -> (i32, i32) {
    %c0_i32 = arith.constant 0 : i32
    %c0_i32_0 = arith.constant 0 : i32
    %c0_i32_1 = arith.constant 0 : i32
    return %c0_i32, %c0_i32_0 : i32, i32
  }
  func.func @transform_2(%arg0: i32) -> (i32, i32) {
    %c0_i32 = arith.constant 0 : i32
    %c0_i32_0 = arith.constant 0 : i32
    %c0_i32_1 = arith.constant 0 : i32
    return %c0_i32, %c0_i32_0 : i32, i32
  }
  func.func @transform_3(%arg0: i32) -> (i32, i32) {
    %c0_i32 = arith.constant 0 : i32
    %c0_i32_0 = arith.constant 0 : i32
    %c0_i32_1 = arith.constant 0 : i32
    return %c0_i32, %c0_i32_0 : i32, i32
  }
  func.func @transform_4(%arg0: i32) -> (i32, i32) {
    %c0_i32 = arith.constant 0 : i32
    %c0_i32_0 = arith.constant 0 : i32
    %c0_i32_1 = arith.constant 0 : i32
    return %c0_i32, %c0_i32_0 : i32, i32
  }
  func.func @transform_5(%arg0: i32) -> (i32, i32) {
    %c0_i32 = arith.constant 0 : i32
    %c0_i32_0 = arith.constant 0 : i32
    %c0_i32_1 = arith.constant 0 : i32
    return %c0_i32, %c0_i32_0 : i32, i32
  }
  func.func @transform_6(%arg0: i32) -> (i32, i32) {
    %c0_i32 = arith.constant 0 : i32
    %c0_i32_0 = arith.constant 0 : i32
    %c0_i32_1 = arith.constant 0 : i32
    return %c0_i32, %c0_i32_0 : i32, i32
  }
  func.func @transform_7(%arg0: i32) -> (i32, i32) {
    %c0_i32 = arith.constant 0 : i32
    %c0_i32_0 = arith.constant 0 : i32
    %c0_i32_1 = arith.constant 0 : i32
    return %c0_i32, %c0_i32_0 : i32, i32
  }
  func.func @transform_8(%arg0: i32) -> (i32, i32) {
    %c0_i32 = arith.constant 0 : i32
    %c0_i32_0 = arith.constant 0 : i32
    %c0_i32_1 = arith.constant 0 : i32
    return %c0_i32, %c0_i32_0 : i32, i32
  }
  func.func @transform_9(%arg0: i32) -> (i32, i32) {
    %c0_i32 = arith.constant 0 : i32
    %c0_i32_0 = arith.constant 0 : i32
    %c0_i32_1 = arith.constant 0 : i32
    return %c0_i32, %c0_i32_0 : i32, i32
  }
  func.func @transform_10(%arg0: i32) -> (i32, i32) {
    %c0_i32 = arith.constant 0 : i32
    %c0_i32_0 = arith.constant 0 : i32
    %c0_i32_1 = arith.constant 0 : i32
    return %c0_i32, %c0_i32_0 : i32, i32
  }
  func.func @transform_11(%arg0: i32) -> (i32, i32) {
    %c0_i32 = arith.constant 0 : i32
    %c0_i32_0 = arith.constant 0 : i32
    %c0_i32_1 = arith.constant 0 : i32
    return %c0_i32, %c0_i32_0 : i32, i32
  }
  func.func @transform_12(%arg0: i32) -> (i32, i32) {
    %c0_i32 = arith.constant 0 : i32
    %c0_i32_0 = arith.constant 0 : i32
    %c0_i32_1 = arith.constant 0 : i32
    return %c0_i32, %c0_i32_0 : i32, i32
  }
  func.func @transform_13(%arg0: i32) -> (i32, i32) {
    %c0_i32 = arith.constant 0 : i32
    %c0_i32_0 = arith.constant 0 : i32
    %c0_i32_1 = arith.constant 0 : i32
    return %c0_i32, %c0_i32_0 : i32, i32
  }
  func.func @transform_14(%arg0: i32) -> (i32, i32) {
    %c0_i32 = arith.constant 0 : i32
    %c0_i32_0 = arith.constant 0 : i32
    %c0_i32_1 = arith.constant 0 : i32
    return %c0_i32, %c0_i32_0 : i32, i32
  }
  func.func @transform_15(%arg0: i32) -> (i32, i32) {
    %c0_i32 = arith.constant 0 : i32
    %c0_i32_0 = arith.constant 0 : i32
    %c0_i32_1 = arith.constant 0 : i32
    return %c0_i32, %c0_i32_0 : i32, i32
  }
}

</mosaic_0001>

<bundles_post_ra>
// kernel: visual_forward.1
= control target key start
LH: loop header
LB: loop body
LE: loop exit
PB: predicated region body
PF: predicated region fallthrough
CT: control target
= control target key end

     0   :  { %21 = vsyncpa [#allocation3], 0  ;;  %s2572_s0 = inlined_call_operand.vmem [shape: f32[64,24], index: 0, kind: input, shape index: {}]   ;;  %s2573_s1 = inlined_call_operand.vmem [shape: f32[64,32], index: 1, kind: input, shape index: {}]   ;;  %s2574_s2 = inlined_call_operand.hbm [shape: f32[24,128], index: 2, kind: input, shape index: {}]   ;;  %s2575_s3 = inlined_call_operand.vmem [shape: f32[32,128], index: 3, kind: input, shape index: {}]   ;;  %s2576_s4 = inlined_call_operand.vmem [shape: f32[1,128], index: 4, kind: input, shape index: {}]   ;;  %s2577_s5 = inlined_call_operand.hbm [shape: f32[32,128], index: 5, kind: input, shape index: {}]   ;;  %s2578_s6 = inlined_call_operand.vmem [shape: f32[1,128], index: 6, kind: input, shape index: {}]   ;;  %s2579_s7 = inlined_call_operand.hbm [shape: f32[32,128], index: 7, kind: input, shape index: {}]   ;;  %s2580_s8 = inlined_call_operand.vmem [shape: f32[1,128], index: 8, kind: input, shape index: {}]   ;;  %s2581_s9 = inlined_call_operand.vmem [shape: f32[128,128], index: 9, kind: input, shape index: {}]   ;;  %s2582_s10 = inlined_call_operand.hbm [shape: f32[1,128], index: 10, kind: input, shape index: {}]   ;;  %s2583_s11 = inlined_call_operand.vmem [shape: f32[128,128], index: 11, kind: input, shape index: {}]   ;;  %s2584_s12 = inlined_call_operand.hbm [shape: f32[1,128], index: 12, kind: input, shape index: {}]   ;;  %s2585_s13 = inlined_call_operand.vmem [shape: f32[8,128], index: 13, kind: output, shape index: {0}]   ;;  %s2586_s14 = inlined_call_operand.vmem [shape: f32[8,128], index: 14, kind: output, shape index: {1}]   ;;  %s2587_s15 = inlined_call_operand.vmem [shape: f32[8,128], index: 15, kind: output, shape index: {2}]  }
   0x1   :  { %22 = vsyncpa [#allocation5], 0 }
   0x2   :  { %23 = vsyncpa [#allocation8], 0  ;;  %s2064_s18 = smov [#allocation4]   ;;  %s2065_s20 = smov [#allocation7]  }
   0x3   :  { %s49_s19 = sshll.u32 %s2064_s18, 4  ;;  %s80_s21 = sshll.u32 %s2065_s20, 4  ;;  %s50_s19 = int_to_ptr.vmem [resolvable:$true] %s49_s19  ;;  %s2157_s21 = int_to_ptr.vmem [resolvable:$true] %s80_s21 }
   0x4   :  { %s1948_s24 = scalar_lea.hbm %s2577_s5, 512 }
   0x5   :  { %p1949_p0 = scmp.ne.s32.totalorder %s2577_s5, %s1948_s24  ;;  %p1952_p1 = scmp.lt.u32.totalorder %s1948_s24, %s2577_s5 }
   0x7   :  { %p1954_p2 = pnand %p1952_p1, %p1949_p0 }
   0x9   :  { %1957 = shalt.err (!%p1954_p2)
}
   0xa   :  { %s1958_s29 = scalar_lea.vmem %s50_s19, 512  ;;  %p1963_p4 = scmp.lt.s32.totalorder %s50_s19, %s50_s19 }
   0xb   :  { %p1959_p3 = scmp.ne.s32.totalorder %s50_s19, %s1958_s29  ;;  %p1964_p5 = scmp.lt.s32.totalorder %s1958_s29, %s1958_s29 }
   0xd   :  { %p1965_p6 = por %p1964_p5, %p1963_p4 }
   0xf   :  { %p1966_p7 = pnand %p1965_p6, %p1959_p3 }
  0x11   :  { %1969 = shalt.err (!%p1966_p7)
}
  0x12   :  { %s2066_s30 = smov 128   ;;  %s2067_s16 = smov 8  }
  0x13   :  { %55 = dma.hbm_to_vmem [thread:$0]  %s2577_s5, 512, %s50_s19, [#allocation5], %s2066_s30, %s2066_s30, %s2067_s16  }
  0x14   :  { %s1970_s23 = scalar_lea.hbm %s2582_s10, 16 }
  0x15   :  { %p1971_p8 = scmp.ne.s32.totalorder %s2582_s10, %s1970_s23  ;;  %p1974_p9 = scmp.lt.u32.totalorder %s1970_s23, %s2582_s10 }
  0x17   :  { %p1976_p10 = pnand %p1974_p9, %p1971_p8 }
  0x19   :  { %1979 = shalt.err (!%p1976_p10)
}
  0x1a   :  { %s1980_s28 = scalar_lea.vmem %s2157_s21, 16  ;;  %s1984_s5 = scalar_lea.vmem %s2157_s21, 32 }
  0x1b   :  { %p1981_p11 = scmp.ne.s32.totalorder %s2157_s21, %s1980_s28  ;;  %p1985_p12 = scmp.lt.s32.totalorder %s2157_s21, %s2157_s21 }
  0x1c   :  { %p1986_p13 = scmp.lt.s32.totalorder %s1984_s5, %s1980_s28 }
  0x1e   :  { %p1987_p0 = por %p1986_p13, %p1985_p12 }
  0x20   :  { %p1988_p1 = pnand %p1987_p0, %p1981_p11 }
  0x22   :  { %1991 = shalt.err (!%p1988_p1)
}
  0x23   :  { %83 = dma.hbm_to_vmem [thread:$0]  %s2582_s10, 16, %s2157_s21, [#allocation8]  }
  0x24   :  { %s2068_s17 = smov [#allocation2]   ;;  %s2069_s20 = smov [#allocation6]  }
  0x25   :  { %s33_s18 = sshll.u32 %s2068_s17, 4  ;;  %s63_s22 = sshll.u32 %s2069_s20, 4  ;;  %s34_s18 = int_to_ptr.vmem [resolvable:$true] %s33_s18  ;;  %s2192_s22 = int_to_ptr.vmem [resolvable:$true] %s63_s22 }
  0x26   :  { %s1992_s25 = scalar_lea.hbm %s2574_s2, 384 }
  0x27   :  { %p1993_p2 = scmp.ne.s32.totalorder %s2574_s2, %s1992_s25  ;;  %p1996_p3 = scmp.lt.u32.totalorder %s1992_s25, %s2574_s2 }
  0x29   :  { %p1998_p4 = pnand %p1996_p3, %p1993_p2 }
  0x2b   :  { %2001 = shalt.err (!%p1998_p4)
}
  0x2c   :  { %s2002_s10 = scalar_lea.vmem %s34_s18, 384  ;;  %p2007_p6 = scmp.lt.s32.totalorder %s34_s18, %s34_s18 }
  0x2d   :  { %p2003_p5 = scmp.ne.s32.totalorder %s34_s18, %s2002_s10  ;;  %p2008_p7 = scmp.lt.s32.totalorder %s2002_s10, %s2002_s10 }
  0x2f   :  { %p2009_p8 = por %p2008_p7, %p2007_p6 }
  0x31   :  { %p2010_p9 = pnand %p2009_p8, %p2003_p5 }
  0x33   :  { %2013 = shalt.err (!%p2010_p9)
}
  0x34   :  { %39 = dma.hbm_to_vmem [thread:$0]  %s2574_s2, 384, %s34_s18, [#allocation3], %s2066_s30, %s2066_s30, %s2067_s16  }
  0x35   :  { %s2014_s20 = scalar_lea.hbm %s2579_s7, 512 }
  0x36   :  { %p2015_p10 = scmp.ne.s32.totalorder %s2579_s7, %s2014_s20  ;;  %p2018_p11 = scmp.lt.u32.totalorder %s2014_s20, %s2579_s7 }
  0x38   :  { %p2020_p12 = pnand %p2018_p11, %p2015_p10 }
  0x3a   :  { %2023 = shalt.err (!%p2020_p12)
}
  0x3b   :  { %s2024_s27 = scalar_lea.vmem %s2192_s22, 512  ;;  %p2029_p0 = scmp.lt.s32.totalorder %s2192_s22, %s2192_s22 }
  0x3c   :  { %p2025_p13 = scmp.ne.s32.totalorder %s2192_s22, %s2024_s27  ;;  %p2030_p1 = scmp.lt.s32.totalorder %s2024_s27, %s2024_s27 }
  0x3e   :  { %p2031_p2 = por %p2030_p1, %p2029_p0 }
  0x40   :  { %p2032_p3 = pnand %p2031_p2, %p2025_p13 }
  0x42   :  { %2035 = shalt.err (!%p2032_p3)
}
  0x43   :  { %69 = dma.hbm_to_vmem [thread:$0]  %s2579_s7, 512, %s2192_s22, [#allocation5], %s2066_s30, %s2066_s30, %s2067_s16  }
  0x44   :  { %s2070_s28 = smov [#allocation9]   ;;  %s2036_s19 = scalar_lea.hbm %s2584_s12, 16 }
  0x45   :  { %s92_s5 = sshll.u32 %s2070_s28, 4  ;;  %p2037_p4 = scmp.ne.s32.totalorder %s2584_s12, %s2036_s19  ;;  %s93_s5 = int_to_ptr.vmem [resolvable:$true] %s92_s5 }
  0x46   :  { %p2040_p5 = scmp.lt.u32.totalorder %s2036_s19, %s2584_s12 }
  0x48   :  { %p2042_p6 = pnand %p2040_p5, %p2037_p4 }
  0x4a   :  { %2045 = shalt.err (!%p2042_p6)
}
  0x4b   :  { %s2046_s24 = scalar_lea.vmem %s93_s5, 16  ;;  %s2050_s7 = scalar_lea.vmem %s93_s5, 32 }
  0x4c   :  { %p2047_p7 = scmp.ne.s32.totalorder %s93_s5, %s2046_s24  ;;  %p2051_p8 = scmp.lt.s32.totalorder %s93_s5, %s93_s5 }
  0x4d   :  { %p2052_p9 = scmp.lt.s32.totalorder %s2050_s7, %s2046_s24 }
  0x4f   :  { %p2053_p10 = por %p2052_p9, %p2051_p8 }
  0x51   :  { %p2054_p11 = pnand %p2053_p10, %p2047_p7 }
  0x53   :  { %2057 = shalt.err (!%p2054_p11)
}
  0x54   :  { %95 = dma.hbm_to_vmem [thread:$0]  %s2584_s12, 16, %s93_s5, [#allocation8]  }
  0x55   :  { %2058 = dma.done.wait [#allocation3], 384  }
  0x56   :  { %2059 = vsyncadd [#allocation3], 4294966912 }
  0x57   :  { %2060 = dma.done.wait [#allocation5], 1024  }
  0x58   :  { %2061 = vsyncadd [#allocation5], 4294966272 }
  0x59   :  { %2062 = dma.done.wait [#allocation8], 32  }
  0x5a   :  { %2063 = vsyncadd [#allocation8], 4294967264  ;;  %vm129_vm0 = vcmask 195584   ;;  %v119_v0 = vld [vmem:[#allocation2] sm:$0xff]  ;;  %v120_v1 = vld [vmem:[#allocation2 + $0x8] sm:$0xff]  ;;  %s2071_s18 = smov 64  }
  0x5b   :  { %v1777_v2 = vpack.c.bf16 %v120_v1, %v119_v0  ;;  %v111_v3 = vld [vmem:[%s2572_s0] sm:$0xff]  ;;  %v121_v4 = vld [vmem:[#allocation2 + $0x10] sm:$0xff]  ;;  %v112_v5 = vld [vmem:[%s2572_s0 + $0x8] sm:$0xff]  ;;  %v2072_v21 = vmov 0.0|0.0   ;;  %s2074_s24 = smov 32   ;;  %vm2075_vm2 = vmmov 0  }
  0x5c   :  { %1596 = vmatprep.mubr.msk.f32.mxu0 %vm129_vm0, %v111_v3  ;;  %v2252_v6 = vld [vmem:[%s2576_s4] ss:$0 sm:$0xff]  ;;  %v287_v19 = vld [vmem:[%s2575_s3 + $0x8] sm:$0xff]  ;;  %v288_v20 = vld [vmem:[%s2575_s3 + $0x10] sm:$0xff]  ;;  %1781 = vmatprep.subr.bf16.mxu1 %v2072_v21  ;;  %v2076_v28 = vmov 0.0   ;;  %vm290_vm3 = vcmask 261120  }
  0x5d   :  { %1778 = vmatprep.subr.bf16.mxu0 %v1777_v2  ;;  %v286_v18 = vld [vmem:[%s2575_s3] sm:$0xff]  ;;  %v289_v23 = vld [vmem:[%s2575_s3 + $0x18] sm:$0xff]  ;;  %s2073_s3 = smov 96   ;;  %1616 = vmatprep.mubr.msk.f32.mxu1 %vm2075_vm2, %v2076_v28  ;;  %v113_v49 = vld [vmem:[%s2572_s0 + $0x10] sm:$0xff] }
  0x5e   :  { %1780 = vmatpush3.bf16.msra.mxu0 %v1777_v2  ;;  %v2266_v22 = vpack.c.bf16 %v287_v19, %v286_v18  ;;  %v2273_v24 = vpack.c.bf16 %v289_v23, %v288_v20  ;;  %v278_v25 = vld [vmem:[%s2573_s1] sm:$0xff]  ;;  %v114_v50 = vld [vmem:[%s2572_s0 + $0x18] sm:$0xff]  ;;  %v394_v52 = vld [vmem:[%s2573_s1 + $0x8] sm:$0xff] }
  0x5f   :  { %1594 = vmatprep.subr.mxu0 %v121_v4  ;;  %vm279_vm1 = vcmp.gt.f32.partialorder %v278_v25, 0.0  ;;  %vm395_vm4 = vcmp.gt.f32.partialorder %v394_v52, 0.0  ;;  %v509_v19 = vld [vmem:[%s2573_s1 + $0x10] sm:$0xff] }
  0x60   :  { %1783 = vmatpush3.bf16.msra.mxu1 %v2266_v22  ;;  %vm510_vm5 = vcmp.gt.f32.partialorder %v509_v19, 0.0 }
  0x61   :  { %1784 = vmatprep.subr.bf16.mxu1 %v2072_v21 }
  0x62   :  { %1595 = vmatpush3.msra.mxu0 %v121_v4 }
  0x63   :  { %1597 = vmatmul.mubr.msk.f32.vlgmr.msra.gmra.mrb[0].mxu0 %vm129_vm0, %v112_v5  ;;  %1793 = vmatprep.subr.bf16.mxu0 %v2072_v21 }
  0x64   :  { %1795 = vmatpush3.bf16.msra.mxu0 %v2266_v22  ;;  %1786 = vmatpush3.bf16.msra.mxu1 %v2273_v24 }
  0x65   :  { %1796 = vmatprep.subr.bf16.mxu0 %v2072_v21  ;;  %1787 = vmatprep.subr.bf16.mxu1 %v2072_v21 }
  0x66   :  { %1599 = vmatprep.mubr.msk.f32.mxu0 %vm129_vm0, %v113_v49 }
  0x67   :  { %1600 = vmatmul.mubr.msk.f32.gmra.mrb[2].mxu0 %vm129_vm0, %v114_v50 }
  0x68   :  { %1798 = vmatpush3.bf16.msra.mxu0 %v2273_v24 }
  0x69   :  { %1805 = vmatprep.subr.bf16.mxu0 %v2072_v21 }
 0x136   :  { %v1598_v7 = vpop.f32.mrb[0].mxu0 }
 0x137   :  { %v220_v8 = vpop.f32.mrb[1].mxu0  ;;  %v226_v33 = vadd.f32 %v1598_v7, %v2252_v6 }
 0x138   :  { %v221_v9 = vadd.f32 %v2252_v6, %v220_v8 }
 0x13a   :  { %v1471_v10 = vmul.f32 -1.442695, %v221_v9  ;;  %v2315_v57 = vpop.f32.mrb[2].mxu0 }
 0x13b   :  { %v230_v58 = vpop.f32.mrb[3].mxu0 }
 0x13c   :  { %1896 = vpow2.f32 %v1471_v10  ;;  %v231_v61 = vadd.f32 %v2252_v6, %v230_v58 }
 0x146   :  { %v1897_v11 = vpop.eup %1896 }
 0x147   :  { %v262_v12 = vadd.f32 1.0, %v1897_v11 }
 0x149   :  { %1898 = vrcp.f32 %v262_v12 }
 0x153   :  { %v1899_v13 = vpop.eup %1898 }
 0x154   :  { %v265_v14 = vmul.f32 2.0, %v1899_v13 }
 0x156   :  { %v1472_v15 = vadd.f32 -1.0, %v265_v14  ;;  %v115_v14 = vld [vmem:[%s2572_s0 + $0x20] sm:$0xff] }
 0x157   :  { %1602 = vmatprep.mubr.msk.f32.mxu0 %vm129_vm0, %v115_v14 }
 0x158   :  { %268 = vrot.lane.b32.xlu0 %v1472_v15, %s2071_s18  ;;  %v116_v15 = vld [vmem:[%s2572_s0 + $0x28] sm:$0xff] }
 0x159   :  { %1603 = vmatmul.mubr.msk.f32.gmra.mrb[4].mxu0 %vm129_vm0, %v116_v15 }
 0x1ca   :  { %v269_v16 = vpop.permute.xlu0 %268 }
 0x1cb   :  { %v271_v17 = vmul.f32 %v1899_v13, %v269_v16  ;;  %v117_v16 = vld [vmem:[%s2572_s0 + $0x30] sm:$0xff] }
 0x1cc   :  { %1605 = vmatprep.mubr.msk.f32.mxu0 %vm129_vm0, %v117_v16 }
 0x1cd   :  { %1900 = vtanh.f32 %v271_v17  ;;  %v285_v27 = vsel %vm279_vm1, %v271_v17, 0.0  ;;  %v118_v17 = vld [vmem:[%s2572_s0 + $0x38] sm:$0xff] }
 0x1ce   :  { %1606 = vmatmul.mubr.msk.f32.gmra.mrb[6].mxu0 %vm129_vm0, %v118_v17 }
 0x1cf   :  { %1638 = vmatprep.mubr.msk.f32.mxu0 %vm2075_vm2, %v2076_v28 }
 0x1d7   :  { %v1901_v26 = vpop.eup %1900 }
 0x1d8   :  { %274 = vrot.lane.b32.xlu0 %v1901_v26, %s2073_s3 }
 0x1dc   :  { %374 = vrot.lane.b32.xlu0 %v285_v27, %s2074_s24 }
 0x24a   :  { %v275_v29 = vpop.permute.xlu0 %274 }
 0x24b   :  { %v277_v30 = vmul.f32 %v1899_v13, %v275_v29 }
 0x24d   :  { %281 = vrot.lane.b32.xlu1 %v277_v30, %s2074_s24 }
 0x24e   :  { %v375_v45 = vpop.permute.xlu0 %374 }
 0x2bf   :  { %v282_v31 = vpop.permute.xlu1 %281 }
 0x2c0   :  { %v284_v32 = vsel %vm279_vm1, %v282_v31, 0.0 }
 0x2c1   :  { %1617 = vmatmul.mubr.msk.f32.vlgmr.msra.gmra.mrb[0].mxu1 %vm290_vm3, %v284_v32 }
 0x2c2   :  { %1789 = vmatpush3.bf16.msra.mxu1 %v2266_v22  ;;  %1627 = vmatprep.mubr.msk.f32.mxu1 %vm2075_vm2, %v2076_v28 }
 0x2c3   :  { %1790 = vmatprep.subr.bf16.mxu1 %v2072_v21 }
 0x2c6   :  { %1792 = vmatpush3.bf16.msra.mxu1 %v2273_v24 }
 0x2c7   :  { %1799 = vmatprep.subr.bf16.mxu1 %v2072_v21 }
 0x394   :  { %v360_v34 = vpop.f32.mrb[0].mxu1 }
 0x395   :  { %v364_v35 = vadd.f32 %v360_v34, %v226_v33  ;;  %v1618_v36 = vpop.f32.mrb[1].mxu1  ;;  %v236_v34 = vadd.f32 %v2315_v57, %v2252_v6 }
 0x397   :  { %v1474_v37 = vmul.f32 -1.442695, %v364_v35 }
 0x399   :  { %1902 = vpow2.f32 %v1474_v37 }
 0x3a3   :  { %v1903_v38 = vpop.eup %1902 }
 0x3a4   :  { %v368_v39 = vadd.f32 1.0, %v1903_v38 }
 0x3a6   :  { %1904 = vrcp.f32 %v368_v39 }
 0x3b0   :  { %v1905_v40 = vpop.eup %1904 }
 0x3b1   :  { %v371_v41 = vmul.f32 2.0, %v1905_v40  ;;  %v377_v46 = vmul.f32 %v1905_v40, %v375_v45 }
 0x3b3   :  { %v1475_v42 = vadd.f32 -1.0, %v371_v41 }
 0x3b5   :  { %379 = vrot.lane.b32.xlu1 %v1475_v42, %s2071_s18 }
 0x427   :  { %v380_v43 = vpop.permute.xlu1 %379 }
 0x428   :  { %v382_v44 = vmul.f32 %v1905_v40, %v380_v43 }
 0x42a   :  { %384 = vrot.lane.b32.xlu1 %v382_v44, %s2074_s24 }
 0x49c   :  { %v385_v47 = vpop.permute.xlu1 %384 }
 0x49d   :  { %v387_v48 = vadd.f32 %v385_v47, %v377_v46 }
 0x49f   :  { %1906 = vtanh.f32 %v387_v48 }
 0x4a9   :  { %v1907_v51 = vpop.eup %1906 }
 0x4aa   :  { %390 = vrot.lane.b32.xlu0 %v1907_v51, %s2071_s18  ;;  %v624_v51 = vld [vmem:[%s2573_s1 + $0x18] sm:$0xff] }
 0x4ab   :  { %vm625_vm6 = vcmp.gt.f32.partialorder %v624_v51, 0.0 }
 0x4ae   :  { %402 = vrot.lane.b32.xlu0 %v387_v48, %s2073_s3 }
 0x51c   :  { %v391_v53 = vpop.permute.xlu0 %390 }
 0x51d   :  { %v393_v54 = vmul.f32 %v1905_v40, %v391_v53 }
 0x51f   :  { %397 = vrot.lane.b32.xlu1 %v393_v54, %s2074_s24 }
 0x520   :  { %v403_v55 = vpop.permute.xlu0 %402 }
 0x521   :  { %v405_v56 = vsel %vm395_vm4, %v403_v55, %v285_v27  ;;  %v2352_v27 = vpop.f32.mrb[4].mxu0 }
 0x522   :  { %489 = vrot.lane.b32.xlu0 %v405_v56, %s2074_s24  ;;  %v240_v29 = vpop.f32.mrb[5].mxu0  ;;  %v246_v19 = vadd.f32 %v2352_v27, %v2252_v6 }
 0x523   :  { %v2354_v30 = vpop.f32.mrb[6].mxu0  ;;  %v241_v58 = vadd.f32 %v2252_v6, %v240_v29 }
 0x524   :  { %v2356_v31 = vpop.f32.mrb[7].mxu0 }
 0x591   :  { %v398_v59 = vpop.permute.xlu1 %397 }
 0x592   :  { %v400_v60 = vsel %vm395_vm4, %v398_v59, %v284_v32 }
 0x593   :  { %1628 = vmatmul.mubr.msk.f32.vlgmr.msra.gmra.mrb[2].mxu1 %vm290_vm3, %v400_v60 }
 0x594   :  { %1801 = vmatpush3.bf16.msra.mxu1 %v2266_v22  ;;  %1649 = vmatprep.mubr.msk.f32.mxu1 %vm2075_vm2, %v2076_v28  ;;  %v490_v10 = vpop.permute.xlu0 %489 }
 0x595   :  { %1802 = vmatprep.subr.bf16.mxu1 %v2072_v21 }
 0x598   :  { %1804 = vmatpush3.bf16.msra.mxu1 %v2273_v24 }
 0x599   :  { %1811 = vmatprep.subr.bf16.mxu1 %v2072_v21 }
 0x666   :  { %v475_v62 = vpop.f32.mrb[2].mxu1 }
 0x667   :  { %v479_v63 = vadd.f32 %v475_v62, %v231_v61  ;;  %v1629_v0 = vpop.f32.mrb[3].mxu1 }
 0x669   :  { %v1477_v1 = vmul.f32 -1.442695, %v479_v63 }
 0x66b   :  { %1908 = vpow2.f32 %v1477_v1 }
 0x675   :  { %v1909_v2 = vpop.eup %1908 }
 0x676   :  { %v483_v3 = vadd.f32 1.0, %v1909_v2 }
 0x678   :  { %1910 = vrcp.f32 %v483_v3 }
 0x682   :  { %v1911_v4 = vpop.eup %1910 }
 0x683   :  { %v486_v5 = vmul.f32 2.0, %v1911_v4  ;;  %v492_v11 = vmul.f32 %v1911_v4, %v490_v10 }
 0x685   :  { %v1478_v7 = vadd.f32 -1.0, %v486_v5 }
 0x687   :  { %494 = vrot.lane.b32.xlu1 %v1478_v7, %s2071_s18 }
 0x6f9   :  { %v495_v8 = vpop.permute.xlu1 %494 }
 0x6fa   :  { %v497_v9 = vmul.f32 %v1911_v4, %v495_v8 }
 0x6fc   :  { %499 = vrot.lane.b32.xlu1 %v497_v9, %s2074_s24 }
 0x76e   :  { %v500_v12 = vpop.permute.xlu1 %499 }
 0x76f   :  { %v502_v13 = vadd.f32 %v500_v12, %v492_v11  ;;  %v739_v12 = vld [vmem:[%s2573_s1 + $0x20] sm:$0xff] }
 0x770   :  { %vm740_vm7 = vcmp.gt.f32.partialorder %v739_v12, 0.0 }
 0x771   :  { %1912 = vtanh.f32 %v502_v13 }
 0x77b   :  { %v1913_v18 = vpop.eup %1912 }
 0x77c   :  { %505 = vrot.lane.b32.xlu0 %v1913_v18, %s2071_s18 }
 0x780   :  { %517 = vrot.lane.b32.xlu0 %v502_v13, %s2073_s3 }
 0x7ee   :  { %v506_v20 = vpop.permute.xlu0 %505 }
 0x7ef   :  { %v508_v23 = vmul.f32 %v1911_v4, %v506_v20 }
 0x7f1   :  { %512 = vrot.lane.b32.xlu1 %v508_v23, %s2074_s24 }
 0x7f2   :  { %v518_v25 = vpop.permute.xlu0 %517 }
 0x7f3   :  { %v520_v26 = vsel %vm510_vm5, %v518_v25, %v405_v56 }
 0x7f4   :  { %604 = vrot.lane.b32.xlu0 %v520_v26, %s2074_s24 }
 0x863   :  { %v513_v32 = vpop.permute.xlu1 %512 }
 0x864   :  { %v515_v33 = vsel %vm510_vm5, %v513_v32, %v400_v60 }
 0x865   :  { %1639 = vmatmul.mubr.msk.f32.vlgmr.msra.gmra.mrb[8].mxu0 %vm290_vm3, %v515_v33 }
 0x866   :  { %1807 = vmatpush3.bf16.msra.mxu0 %v2266_v22  ;;  %1660 = vmatprep.mubr.msk.f32.mxu0 %vm2075_vm2, %v2076_v28  ;;  %v605_v46 = vpop.permute.xlu0 %604 }
 0x867   :  { %1808 = vmatprep.subr.bf16.mxu0 %v2072_v21 }
 0x86a   :  { %1810 = vmatpush3.bf16.msra.mxu0 %v2273_v24 }
 0x86b   :  { %1817 = vmatprep.subr.bf16.mxu0 %v2072_v21 }
 0x938   :  { %v590_v35 = vpop.f32.mrb[8].mxu0 }
 0x939   :  { %v594_v36 = vadd.f32 %v590_v35, %v236_v34  ;;  %v1640_v37 = vpop.f32.mrb[9].mxu0 }
 0x93b   :  { %v1480_v38 = vmul.f32 -1.442695, %v594_v36 }
 0x93d   :  { %1914 = vpow2.f32 %v1480_v38 }
 0x947   :  { %v1915_v39 = vpop.eup %1914 }
 0x948   :  { %v598_v40 = vadd.f32 1.0, %v1915_v39 }
 0x94a   :  { %1916 = vrcp.f32 %v598_v40  ;;  %v854_v40 = vld [vmem:[%s2573_s1 + $0x28] sm:$0xff] }
 0x94b   :  { %vm855_vm8 = vcmp.gt.f32.partialorder %v854_v40, 0.0  ;;  %v1084_v40 = vld [vmem:[%s2573_s1 + $0x38] sm:$0xff] }
 0x94c   :  { %vm1085_vm10 = vcmp.gt.f32.partialorder %v1084_v40, 0.0 }
 0x954   :  { %v1917_v41 = vpop.eup %1916 }
 0x955   :  { %v601_v42 = vmul.f32 2.0, %v1917_v41  ;;  %v607_v47 = vmul.f32 %v1917_v41, %v605_v46 }
 0x957   :  { %v1481_v43 = vadd.f32 -1.0, %v601_v42 }
 0x959   :  { %609 = vrot.lane.b32.xlu1 %v1481_v43, %s2071_s18 }
 0x9cb   :  { %v610_v44 = vpop.permute.xlu1 %609 }
 0x9cc   :  { %v612_v45 = vmul.f32 %v1917_v41, %v610_v44 }
 0x9ce   :  { %614 = vrot.lane.b32.xlu1 %v612_v45, %s2074_s24 }
 0xa40   :  { %v615_v48 = vpop.permute.xlu1 %614 }
 0xa41   :  { %v617_v49 = vadd.f32 %v615_v48, %v607_v47  ;;  %v251_v47 = vadd.f32 %v2252_v6, %v2356_v31 }
 0xa43   :  { %1918 = vtanh.f32 %v617_v49 }
 0xa4d   :  { %v1919_v50 = vpop.eup %1918 }
 0xa4e   :  { %620 = vrot.lane.b32.xlu0 %v1919_v50, %s2071_s18 }
 0xa52   :  { %632 = vrot.lane.b32.xlu0 %v617_v49, %s2073_s3 }
 0xac0   :  { %v621_v52 = vpop.permute.xlu0 %620 }
 0xac1   :  { %v623_v53 = vmul.f32 %v1917_v41, %v621_v52 }
 0xac3   :  { %627 = vrot.lane.b32.xlu1 %v623_v53, %s2074_s24 }
 0xac4   :  { %v633_v54 = vpop.permute.xlu0 %632 }
 0xac5   :  { %v635_v55 = vsel %vm625_vm6, %v633_v54, %v520_v26 }
 0xac6   :  { %719 = vrot.lane.b32.xlu0 %v635_v55, %s2074_s24 }
 0xb35   :  { %v628_v56 = vpop.permute.xlu1 %627 }
 0xb36   :  { %v630_v57 = vsel %vm625_vm6, %v628_v56, %v515_v33 }
 0xb37   :  { %1650 = vmatmul.mubr.msk.f32.vlgmr.msra.gmra.mrb[4].mxu1 %vm290_vm3, %v630_v57 }
 0xb38   :  { %1813 = vmatpush3.bf16.msra.mxu1 %v2266_v22  ;;  %1671 = vmatprep.mubr.msk.f32.mxu1 %vm2075_vm2, %v2076_v28  ;;  %v720_v7 = vpop.permute.xlu0 %719 }
 0xb39   :  { %1814 = vmatprep.subr.bf16.mxu1 %v2072_v21 }
 0xb3c   :  { %1816 = vmatpush3.bf16.msra.mxu1 %v2273_v24 }
 0xb3d   :  { %1823 = vmatprep.subr.bf16.mxu1 %v2072_v21 }
 0xc0a   :  { %v705_v59 = vpop.f32.mrb[4].mxu1 }
 0xc0b   :  { %v709_v60 = vadd.f32 %v705_v59, %v241_v58  ;;  %v1651_v61 = vpop.f32.mrb[5].mxu1 }
 0xc0d   :  { %v1483_v62 = vmul.f32 -1.442695, %v709_v60 }
 0xc0f   :  { %1920 = vpow2.f32 %v1483_v62 }
 0xc19   :  { %v1921_v63 = vpop.eup %1920 }
 0xc1a   :  { %v713_v0 = vadd.f32 1.0, %v1921_v63  ;;  %v969_v63 = vld [vmem:[%s2573_s1 + $0x30] sm:$0xff] }
 0xc1b   :  { %vm970_vm9 = vcmp.gt.f32.partialorder %v969_v63, 0.0  ;;  %v1273_v63 = vld [vmem:[%s2581_s9 + $0x78] sm:$0xff] }
 0xc1c   :  { %1922 = vrcp.f32 %v713_v0 }
 0xc26   :  { %v1923_v1 = vpop.eup %1922 }
 0xc27   :  { %v716_v2 = vmul.f32 2.0, %v1923_v1  ;;  %v722_v8 = vmul.f32 %v1923_v1, %v720_v7  ;;  %v256_v7 = vadd.f32 %v2354_v30, %v2252_v6 }
 0xc29   :  { %v1484_v3 = vadd.f32 -1.0, %v716_v2 }
 0xc2b   :  { %724 = vrot.lane.b32.xlu1 %v1484_v3, %s2071_s18 }
 0xc9d   :  { %v725_v4 = vpop.permute.xlu1 %724 }
 0xc9e   :  { %v727_v5 = vmul.f32 %v1923_v1, %v725_v4 }
 0xca0   :  { %729 = vrot.lane.b32.xlu1 %v727_v5, %s2074_s24 }
 0xd12   :  { %v730_v9 = vpop.permute.xlu1 %729 }
 0xd13   :  { %v732_v10 = vadd.f32 %v730_v9, %v722_v8 }
 0xd15   :  { %1924 = vtanh.f32 %v732_v10 }
 0xd1f   :  { %v1925_v11 = vpop.eup %1924 }
 0xd20   :  { %735 = vrot.lane.b32.xlu0 %v1925_v11, %s2071_s18 }
 0xd24   :  { %747 = vrot.lane.b32.xlu0 %v732_v10, %s2073_s3 }
 0xd92   :  { %v736_v13 = vpop.permute.xlu0 %735 }
 0xd93   :  { %v738_v14 = vmul.f32 %v1923_v1, %v736_v13 }
 0xd95   :  { %742 = vrot.lane.b32.xlu1 %v738_v14, %s2074_s24 }
 0xd96   :  { %v748_v15 = vpop.permute.xlu0 %747 }
 0xd97   :  { %v750_v16 = vsel %vm740_vm7, %v748_v15, %v635_v55 }
 0xd98   :  { %834 = vrot.lane.b32.xlu0 %v750_v16, %s2074_s24 }
 0xe07   :  { %v743_v17 = vpop.permute.xlu1 %742 }
 0xe08   :  { %v745_v18 = vsel %vm740_vm7, %v743_v17, %v630_v57 }
 0xe09   :  { %1661 = vmatmul.mubr.msk.f32.vlgmr.msra.gmra.mrb[10].mxu0 %vm290_vm3, %v745_v18 }
 0xe0a   :  { %1819 = vmatpush3.bf16.msra.mxu0 %v2266_v22  ;;  %1682 = vmatprep.mubr.msk.f32.mxu0 %vm2075_vm2, %v2076_v28  ;;  %v835_v36 = vpop.permute.xlu0 %834 }
 0xe0b   :  { %1820 = vmatprep.subr.bf16.mxu0 %v2072_v21 }
 0xe0e   :  { %1822 = vmatpush3.bf16.msra.mxu0 %v2273_v24 }
 0xe0f   :  { %1829 = vmatprep.subr.bf16.mxu0 %v2072_v21 }
 0xedc   :  { %v820_v20 = vpop.f32.mrb[10].mxu0 }
 0xedd   :  { %v824_v23 = vadd.f32 %v820_v20, %v246_v19  ;;  %v1662_v25 = vpop.f32.mrb[11].mxu0 }
 0xede   :  { %v1092_v25 = vld [vmem:[#allocation4 + $0x8] sm:$0xff] }
 0xedf   :  { %v1486_v26 = vmul.f32 -1.442695, %v824_v23  ;;  %v1091_v23 = vld [vmem:[#allocation4] sm:$0xff] }
 0xee1   :  { %1926 = vpow2.f32 %v1486_v26  ;;  %v1176_v26 = vld [vmem:[#allocation6] sm:$0xff] }
 0xeeb   :  { %v1927_v29 = vpop.eup %1926 }
 0xeec   :  { %v828_v32 = vadd.f32 1.0, %v1927_v29  ;;  %v1824_v29 = vpack.c.bf16 %v1092_v25, %v1091_v23 }
 0xeee   :  { %1928 = vrcp.f32 %v828_v32  ;;  %v1177_v32 = vld [vmem:[#allocation6 + $0x8] sm:$0xff] }
 0xef8   :  { %v1929_v22 = vpop.eup %1928 }
 0xef9   :  { %v831_v33 = vmul.f32 2.0, %v1929_v22  ;;  %v837_v37 = vmul.f32 %v1929_v22, %v835_v36 }
 0xefb   :  { %v1487_v34 = vadd.f32 -1.0, %v831_v33  ;;  %v1094_v33 = vld [vmem:[#allocation4 + $0x18] sm:$0xff] }
 0xefd   :  { %839 = vrot.lane.b32.xlu1 %v1487_v34, %s2071_s18  ;;  %v1830_v34 = vpack.c.bf16 %v1177_v32, %v1176_v26  ;;  %v1364_v32 = vld [vmem:[%s2583_s11 + $0x58] sm:$0xff] }
 0xf6f   :  { %v840_v35 = vpop.permute.xlu1 %839 }
 0xf70   :  { %v842_v24 = vmul.f32 %v1929_v22, %v840_v35  ;;  %v1178_v35 = vld [vmem:[#allocation6 + $0x10] sm:$0xff] }
 0xf72   :  { %844 = vrot.lane.b32.xlu1 %v842_v24, %s2074_s24  ;;  %v1179_v24 = vld [vmem:[#allocation6 + $0x18] sm:$0xff] }
 0xfe4   :  { %v845_v27 = vpop.permute.xlu1 %844 }
 0xfe5   :  { %v847_v38 = vadd.f32 %v845_v27, %v837_v37  ;;  %v1833_v37 = vpack.c.bf16 %v1179_v24, %v1178_v35  ;;  %v1367_v24 = vld [vmem:[%s2583_s11 + $0x70] sm:$0xff] }
 0xfe7   :  { %1930 = vtanh.f32 %v847_v38 }
 0xff1   :  { %v1931_v39 = vpop.eup %1930 }
 0xff2   :  { %850 = vrot.lane.b32.xlu0 %v1931_v39, %s2071_s18 }
 0xff6   :  { %862 = vrot.lane.b32.xlu0 %v847_v38, %s2073_s3 }
0x1064   :  { %v851_v41 = vpop.permute.xlu0 %850 }
0x1065   :  { %v853_v42 = vmul.f32 %v1929_v22, %v851_v41  ;;  %v1093_v22 = vld [vmem:[#allocation4 + $0x10] sm:$0xff]  ;;  %v1258_v41 = vld [vmem:[%s2581_s9] sm:$0xff] }
0x1066   :  { %v1827_v36 = vpack.c.bf16 %v1094_v33, %v1093_v22  ;;  %v1365_v33 = vld [vmem:[%s2583_s11 + $0x60] sm:$0xff] }
0x1067   :  { %857 = vrot.lane.b32.xlu1 %v853_v42, %s2074_s24  ;;  %v1259_v42 = vld [vmem:[%s2581_s9 + $0x8] sm:$0xff] }
0x1068   :  { %v863_v43 = vpop.permute.xlu0 %862 }
0x1069   :  { %v865_v44 = vsel %vm855_vm8, %v863_v43, %v750_v16  ;;  %v1836_v43 = vpack.c.bf16 %v1259_v42, %v1258_v41 }
0x106a   :  { %949 = vrot.lane.b32.xlu0 %v865_v44, %s2074_s24 }
0x10d9   :  { %v858_v45 = vpop.permute.xlu1 %857 }
0x10da   :  { %v860_v46 = vsel %vm855_vm8, %v858_v45, %v745_v18  ;;  %v1260_v45 = vld [vmem:[%s2581_s9 + $0x10] sm:$0xff] }
0x10db   :  { %1672 = vmatmul.mubr.msk.f32.vlgmr.msra.gmra.mrb[6].mxu1 %vm290_vm3, %v860_v46 }
0x10dc   :  { %1693 = vmatprep.mubr.msk.f32.mxu1 %vm2075_vm2, %v2076_v28  ;;  %v950_v59 = vpop.permute.xlu0 %949  ;;  %1825 = vmatpush3.bf16.msra.mxu1 %v1824_v29  ;;  %v1363_v29 = vld [vmem:[%s2583_s11 + $0x50] sm:$0xff] }
0x10dd   :  { %1826 = vmatprep.subr.bf16.mxu1 %v2072_v21  ;;  %v1875_v22 = vpack.c.bf16 %v1364_v32, %v1363_v29 }
0x10e0   :  { %1828 = vmatpush3.bf16.msra.mxu1 %v1827_v36  ;;  %v1368_v36 = vld [vmem:[%s2583_s11 + $0x78] sm:$0xff] }
0x10e1   :  { %1835 = vmatprep.subr.bf16.mxu1 %v2072_v21 }
0x11ae   :  { %v935_v48 = vpop.f32.mrb[6].mxu1 }
0x11af   :  { %v939_v49 = vadd.f32 %v935_v48, %v251_v47  ;;  %v1673_v50 = vpop.f32.mrb[7].mxu1 }
0x11b0   :  { %v1263_v50 = vld [vmem:[%s2581_s9 + $0x28] sm:$0xff] }
0x11b1   :  { %v1489_v51 = vmul.f32 -1.442695, %v939_v49  ;;  %v1262_v49 = vld [vmem:[%s2581_s9 + $0x20] sm:$0xff] }
0x11b3   :  { %1932 = vpow2.f32 %v1489_v51  ;;  %v1842_v51 = vpack.c.bf16 %v1263_v50, %v1262_v49 }
0x11bd   :  { %v1933_v52 = vpop.eup %1932 }
0x11be   :  { %v943_v53 = vadd.f32 1.0, %v1933_v52  ;;  %v1264_v52 = vld [vmem:[%s2581_s9 + $0x30] sm:$0xff] }
0x11c0   :  { %1934 = vrcp.f32 %v943_v53  ;;  %v1265_v53 = vld [vmem:[%s2581_s9 + $0x38] sm:$0xff] }
0x11ca   :  { %v1935_v54 = vpop.eup %1934 }
0x11cb   :  { %v946_v55 = vmul.f32 2.0, %v1935_v54  ;;  %v952_v60 = vmul.f32 %v1935_v54, %v950_v59 }
0x11cd   :  { %v1490_v56 = vadd.f32 -1.0, %v946_v55  ;;  %v1267_v55 = vld [vmem:[%s2581_s9 + $0x48] sm:$0xff] }
0x11cf   :  { %954 = vrot.lane.b32.xlu1 %v1490_v56, %s2071_s18 }
0x1241   :  { %v955_v57 = vpop.permute.xlu1 %954 }
0x1242   :  { %v957_v58 = vmul.f32 %v1935_v54, %v955_v57  ;;  %v1268_v57 = vld [vmem:[%s2581_s9 + $0x50] sm:$0xff] }
0x1244   :  { %959 = vrot.lane.b32.xlu1 %v957_v58, %s2074_s24  ;;  %v1269_v58 = vld [vmem:[%s2581_s9 + $0x58] sm:$0xff] }
0x1245   :  { %v1851_v59 = vpack.c.bf16 %v1269_v58, %v1268_v57 }
0x12b6   :  { %v960_v31 = vpop.permute.xlu1 %959 }
0x12b7   :  { %v962_v61 = vadd.f32 %v960_v31, %v952_v60  ;;  %v1270_v60 = vld [vmem:[%s2581_s9 + $0x60] sm:$0xff]  ;;  %v1271_v31 = vld [vmem:[%s2581_s9 + $0x68] sm:$0xff] }
0x12b9   :  { %1936 = vtanh.f32 %v962_v61 }
0x12c3   :  { %v1937_v62 = vpop.eup %1936 }
0x12c4   :  { %965 = vrot.lane.b32.xlu0 %v1937_v62, %s2071_s18  ;;  %v1272_v62 = vld [vmem:[%s2581_s9 + $0x70] sm:$0xff] }
0x12c8   :  { %977 = vrot.lane.b32.xlu0 %v962_v61, %s2073_s3  ;;  %v1854_v61 = vpack.c.bf16 %v1271_v31, %v1270_v60 }
0x1336   :  { %v966_v0 = vpop.permute.xlu0 %965 }
0x1337   :  { %v968_v1 = vmul.f32 %v1935_v54, %v966_v0  ;;  %v1845_v54 = vpack.c.bf16 %v1265_v53, %v1264_v52  ;;  %v1857_v0 = vpack.c.bf16 %v1273_v63, %v1272_v62 }
0x1339   :  { %972 = vrot.lane.b32.xlu1 %v968_v1, %s2074_s24  ;;  %v1353_v1 = vld [vmem:[%s2583_s11] sm:$0xff] }
0x133a   :  { %v978_v2 = vpop.permute.xlu0 %977 }
0x133b   :  { %v980_v3 = vsel %vm970_vm9, %v978_v2, %v865_v44  ;;  %v1354_v2 = vld [vmem:[%s2583_s11 + $0x8] sm:$0xff] }
0x133c   :  { %1064 = vrot.lane.b32.xlu0 %v980_v3, %s2074_s24  ;;  %v1355_v3 = vld [vmem:[%s2583_s11 + $0x10] sm:$0xff] }
0x13ab   :  { %v973_v4 = vpop.permute.xlu1 %972 }
0x13ac   :  { %v975_v5 = vsel %vm970_vm9, %v973_v4, %v860_v46  ;;  %v1261_v46 = vld [vmem:[%s2581_s9 + $0x18] sm:$0xff]  ;;  %v1860_v4 = vpack.c.bf16 %v1354_v2, %v1353_v1 }
0x13ad   :  { %1683 = vmatmul.mubr.msk.f32.vlgmr.msra.gmra.mrb[12].mxu0 %vm290_vm3, %v975_v5  ;;  %v1839_v48 = vpack.c.bf16 %v1261_v46, %v1260_v45 }
0x13ae   :  { %1704 = vmatprep.mubr.msk.f32.mxu0 %vm2075_vm2, %v2076_v28  ;;  %v1065_v19 = vpop.permute.xlu0 %1064  ;;  %1831 = vmatpush3.bf16.msra.mxu0 %v1830_v34  ;;  %v1366_v34 = vld [vmem:[%s2583_s11 + $0x68] sm:$0xff] }
0x13af   :  { %1832 = vmatprep.subr.bf16.mxu0 %v2072_v21  ;;  %v1878_v35 = vpack.c.bf16 %v1366_v34, %v1365_v33 }
0x13b2   :  { %1834 = vmatpush3.bf16.msra.mxu0 %v1833_v37  ;;  %v1881_v37 = vpack.c.bf16 %v1368_v36, %v1367_v24 }
0x13b3   :  { %1859 = vmatprep.subr.bf16.mxu0 %v2072_v21 }
0x1480   :  { %v1050_v8 = vpop.f32.mrb[12].mxu0 }
0x1481   :  { %v1054_v9 = vadd.f32 %v1050_v8, %v256_v7  ;;  %v1684_v10 = vpop.f32.mrb[13].mxu0  ;;  %v1357_v8 = vld [vmem:[%s2583_s11 + $0x20] sm:$0xff] }
0x1483   :  { %v1492_v11 = vmul.f32 -1.442695, %v1054_v9  ;;  %v1358_v9 = vld [vmem:[%s2583_s11 + $0x28] sm:$0xff] }
0x1484   :  { %v1866_v10 = vpack.c.bf16 %v1358_v9, %v1357_v8 }
0x1485   :  { %1938 = vpow2.f32 %v1492_v11  ;;  %v1359_v11 = vld [vmem:[%s2583_s11 + $0x30] sm:$0xff] }
0x148f   :  { %v1939_v12 = vpop.eup %1938 }
0x1490   :  { %v1058_v13 = vadd.f32 1.0, %v1939_v12  ;;  %v1360_v12 = vld [vmem:[%s2583_s11 + $0x38] sm:$0xff] }
0x1492   :  { %1940 = vrcp.f32 %v1058_v13  ;;  %v1869_v13 = vpack.c.bf16 %v1360_v12, %v1359_v11 }
0x149c   :  { %v1941_v14 = vpop.eup %1940 }
0x149d   :  { %v1061_v15 = vmul.f32 2.0, %v1941_v14  ;;  %v1067_v20 = vmul.f32 %v1941_v14, %v1065_v19 }
0x149f   :  { %v1493_v16 = vadd.f32 -1.0, %v1061_v15  ;;  %v1362_v15 = vld [vmem:[%s2583_s11 + $0x48] sm:$0xff] }
0x14a1   :  { %1069 = vrot.lane.b32.xlu1 %v1493_v16, %s2071_s18 }
0x1513   :  { %v1070_v17 = vpop.permute.xlu1 %1069 }
0x1514   :  { %v1072_v18 = vmul.f32 %v1941_v14, %v1070_v17  ;;  %v1494_v17 = vld [vmem:[%s2578_s6] ss:$0 sm:$0xff] }
0x1516   :  { %1074 = vrot.lane.b32.xlu1 %v1072_v18, %s2074_s24  ;;  %v1496_v18 = vld [vmem:[%s2580_s8] ss:$0 sm:$0xff] }
0x1588   :  { %v1075_v6 = vpop.permute.xlu1 %1074 }
0x1589   :  { %v1077_v30 = vadd.f32 %v1075_v6, %v1067_v20 }
0x158b   :  { %1942 = vtanh.f32 %v1077_v30 }
0x1595   :  { %v1943_v27 = vpop.eup %1942 }
0x1596   :  { %1080 = vrot.lane.b32.xlu0 %v1943_v27, %s2071_s18  ;;  %v1498_v27 = vld [vmem:[#allocation7] ss:$0 sm:$0xff] }
0x1608   :  { %v1081_v38 = vpop.permute.xlu0 %1080 }
0x1609   :  { %v1083_v39 = vmul.f32 %v1941_v14, %v1081_v38  ;;  %v1361_v14 = vld [vmem:[%s2583_s11 + $0x40] sm:$0xff] }
0x160a   :  { %v1872_v16 = vpack.c.bf16 %v1362_v15, %v1361_v14 }
0x160b   :  { %1087 = vrot.lane.b32.xlu1 %v1083_v39, %s2074_s24 }
0x167d   :  { %v1088_v44 = vpop.permute.xlu1 %1087 }
0x167e   :  { %v1090_v47 = vsel %vm1085_vm10, %v1088_v44, %v975_v5  ;;  %v1356_v5 = vld [vmem:[%s2583_s11 + $0x18] sm:$0xff] }
0x167f   :  { %1694 = vmatmul.mubr.msk.f32.vlgmr.msra.gmra.mrb[8].mxu1 %vm290_vm3, %v1090_v47  ;;  %1705 = vmatmul.mubr.msk.f32.vlgmr.msra.gmra.mrb[14].mxu0 %vm290_vm3, %v1090_v47  ;;  %v1863_v7 = vpack.c.bf16 %v1356_v5, %v1355_v3 }
0x1680   :  { %1837 = vmatpush3.bf16.msra.mxu1 %v1836_v43  ;;  %1739 = vmatprep.mubr.msk.f32.mxu1 %vm2075_vm2, %v2076_v28 }
0x1681   :  { %1838 = vmatprep.subr.bf16.mxu1 %v2072_v21  ;;  %1774 = vmatprep.mubr.msk.f32.mxu0 %vm2075_vm2, %v2076_v28  ;;  %v1266_v28 = vld [vmem:[%s2581_s9 + $0x40] sm:$0xff] }
0x1682   :  { %v1848_v56 = vpack.c.bf16 %v1267_v55, %v1266_v28  ;;  %1861 = vmatpush3.bf16.msra.mxu0 %v1860_v4 }
0x1683   :  { %1862 = vmatprep.subr.bf16.mxu0 %v2072_v21 }
0x1684   :  { %1840 = vmatpush3.bf16.msra.mxu1 %v1839_v48 }
0x1685   :  { %1841 = vmatprep.subr.bf16.mxu1 %v2072_v21 }
0x1686   :  { %1864 = vmatpush3.bf16.msra.mxu0 %v1863_v7 }
0x1687   :  { %1865 = vmatprep.subr.bf16.mxu0 %v2072_v21 }
0x1688   :  { %1843 = vmatpush3.bf16.msra.mxu1 %v1842_v51 }
0x1689   :  { %1844 = vmatprep.subr.bf16.mxu1 %v2072_v21 }
0x168a   :  { %1867 = vmatpush3.bf16.msra.mxu0 %v1866_v10 }
0x168b   :  { %1868 = vmatprep.subr.bf16.mxu0 %v2072_v21 }
0x168c   :  { %1846 = vmatpush3.bf16.msra.mxu1 %v1845_v54 }
0x168d   :  { %1847 = vmatprep.subr.bf16.mxu1 %v2072_v21 }
0x168e   :  { %1870 = vmatpush3.bf16.msra.mxu0 %v1869_v13 }
0x168f   :  { %1871 = vmatprep.subr.bf16.mxu0 %v2072_v21 }
0x1690   :  { %1849 = vmatpush3.bf16.msra.mxu1 %v1848_v56 }
0x1691   :  { %1850 = vmatprep.subr.bf16.mxu1 %v2072_v21 }
0x1692   :  { %1873 = vmatpush3.bf16.msra.mxu0 %v1872_v16 }
0x1693   :  { %1874 = vmatprep.subr.bf16.mxu0 %v2072_v21 }
0x1694   :  { %1852 = vmatpush3.bf16.msra.mxu1 %v1851_v59 }
0x1695   :  { %1853 = vmatprep.subr.bf16.mxu1 %v2072_v21 }
0x1696   :  { %1876 = vmatpush3.bf16.msra.mxu0 %v1875_v22 }
0x1697   :  { %1877 = vmatprep.subr.bf16.mxu0 %v2072_v21 }
0x1698   :  { %1855 = vmatpush3.bf16.msra.mxu1 %v1854_v61 }
0x1699   :  { %1856 = vmatprep.subr.bf16.mxu1 %v2072_v21 }
0x169a   :  { %1879 = vmatpush3.bf16.msra.mxu0 %v1878_v35 }
0x169b   :  { %1880 = vmatprep.subr.bf16.mxu0 %v2072_v21  ;;  %v1499_v21 = vld [vmem:[#allocation9] ss:$0 sm:$0xff] }
0x169c   :  { %1858 = vmatpush3.bf16.msra.mxu1 %v1857_v0 }
0x169e   :  { %1882 = vmatpush3.bf16.msra.mxu0 %v1881_v37 }
0x1752   :  { %v1171_v19 = vpop.f32.mrb[8].mxu1  ;;  %v1253_v20 = vpop.f32.mrb[14].mxu0 }
0x1753   :  { %v1172_v6 = vadd.f32 %v1494_v17, %v1171_v19  ;;  %v1254_v30 = vadd.f32 %v1496_v18, %v1253_v20  ;;  %v1695_v23 = vpop.f32.mrb[9].mxu1  ;;  %v1706_v25 = vpop.f32.mrb[15].mxu0 }
0x1755   :  { %1175 = vst [vmem:[%s2585_s13] sm:$0xff] %v1172_v6  ;;  %1944 = vtanh.f32 %v1254_v30 }
0x175f   :  { %v1945_v26 = vpop.eup %1944 }
0x1760   :  { %1740 = vmatmul.mubr.f32.vlgmr.msra.gmra.mrb[10].mxu1 %v1945_v26 }
0x1833   :  { %v1347_v38 = vpop.f32.mrb[10].mxu1 }
0x1834   :  { %v1348_v39 = vadd.f32 %v1498_v27, %v1347_v38  ;;  %v1741_v40 = vpop.f32.mrb[11].mxu1 }
0x1836   :  { %1946 = vtanh.f32 %v1348_v39 }
0x1840   :  { %v1947_v41 = vpop.eup %1946 }
0x1841   :  { %1352 = vst [vmem:[%s2586_s14] sm:$0xff] %v1947_v41  ;;  %1775 = vmatmul.mubr.f32.vlgmr.msra.gmra.mrb[16].mxu0 %v1947_v41 }
0x1914   :  { %v1442_v42 = vpop.f32.mrb[16].mxu0 }
0x1915   :  { %v1443_v43 = vadd.f32 %v1499_v21, %v1442_v42  ;;  %v1776_v44 = vpop.f32.mrb[17].mxu0 }
0x1917   :  { %1446 = vst [vmem:[%s2587_s15] sm:$0xff] %v1443_v43 }
0x1918   :  { %1459 = vsyncpa [#allocation3], 1 }
0x1919   :  { %1460 = vsyncpa [#allocation5], 1 }
0x191a   :  { %1461 = vsyncpa [#allocation8], 1 }

</bundles_post_ra>
